<compile_context>
chip_gen: v7x
topology: tpu7x:2x2x1
jax: 0.10.0
libtpu: 0.0.40
codegen_flags: <defaults>
</compile_context>

<pallas_src>
import functools
from typing import Union

import jax
import jax.numpy as jnp
from jax.experimental import pallas as pl
from jax.experimental.pallas import tpu as pltpu

IntOrPair = Union[int, tuple[int, int]]


def force_pair(v: IntOrPair) -> tuple[int, int]:
    if isinstance(v, tuple):
        if len(v) != 2:
            raise ValueError(v)
        return (int(v[0]), int(v[1]))
    elif isinstance(v, int):
        return (v, v)
    raise ValueError(v)


# ---------------- Pallas kernel: fused tap-accumulation conv ----------------

def _conv_tap_kernel(x_ref, w_ref, o_ref, acc_ref, *, KH, KW, SH, SW, OH, OW):
    """One padded image -> one output image.

    x_ref:   (1, Hp, Wp, C)    bf16   padded input, NHWC
    w_ref:   (KH, KW, C, OCp)  bf16   weight, lane-dense OCp (mult of 128)
    o_ref:   (1, OH, OW, OCp)  f32    output
    acc_ref: (OH*OW, OCp)      f32    VMEM accumulator scratch
    """
    C = x_ref.shape[-1]
    OCp = o_ref.shape[-1]

    acc_ref[...] = jnp.zeros_like(acc_ref)
    for kh in range(KH):
        hsl = pl.ds(kh, OH) if SH == 1 else pl.ds(kh, OH, SH)
        for kw in range(KW):
            wsl = pl.ds(kw, OW) if SW == 1 else pl.ds(kw, OW, SW)
            # Strided tap window straight from the VMEM-resident image.
            xt = x_ref[0, hsl, wsl, :]                    # (OH, OW, C)
            # OW is kept a multiple of 8 in practice so this reshape is a
            # layout-preserving (free) collapse of the two major dims.
            a = xt.reshape(OH * OW, C)                    # (OH*OW, C) bf16
            acc_ref[...] += jnp.dot(a, w_ref[kh, kw],
                                    preferred_element_type=jnp.float32)
    o_ref[...] = acc_ref[...].reshape(1, OH, OW, OCp).astype(o_ref.dtype)


@functools.partial(jax.jit, static_argnames=("stride", "padding"))
def conv2d_pallas(x: jax.Array, weight: jax.Array, *, stride, padding):
    """x: (B, C, H, W) f32, weight: (OC, C, KH, KW) f32 -> (B, OC, OH, OW) f32."""
    B, C, H, W = x.shape
    OC, C2, KH, KW = weight.shape
    assert C == C2
    SH, SW = stride
    PH, PW = padding
    OH = (H + 2 * PH - KH) // SH + 1
    OW = (W + 2 * PW - KW) // SW + 1
    Hp, Wp = H + 2 * PH, W + 2 * PW
    OCp = ((OC + 127) // 128) * 128          # lane-dense output channels

    # NCHW -> NHWC, zero-pad spatial, cast to bf16 (single fused XLA pass).
    x_nhwc = jnp.transpose(x, (0, 2, 3, 1))
    x_pad = jnp.pad(x_nhwc, ((0, 0), (PH, PH), (PW, PW), (0, 0)))
    x_pad = x_pad.astype(jnp.bfloat16)       # (B, Hp, Wp, C)

    # (OC, C, KH, KW) -> (KH, KW, C, OCp), zero-padded OC columns, bf16.
    w_taps = jnp.transpose(weight, (2, 3, 1, 0))
    w_taps = jnp.pad(w_taps, ((0, 0), (0, 0), (0, 0), (0, OCp - OC)))
    w_taps = w_taps.astype(jnp.bfloat16)     # (KH, KW, C, OCp)

    kernel = functools.partial(
        _conv_tap_kernel, KH=KH, KW=KW, SH=SH, SW=SW, OH=OH, OW=OW)

    bytes_accessed = (B * Hp * Wp * C * 2            # bf16 input read
                      + KH * KW * C * OCp * 2        # bf16 weight read (once)
                      + B * OH * OW * OCp * 4)       # f32 output write

    # TODO(synk): add OH-row tiling with halo DMA (manual make_async_copy) for
    # images whose padded NHWC slab exceeds VMEM; current design holds one full
    # image per grid step, which is fine for small/medium spatial sizes.
    out = pl.pallas_call(
        kernel,
        out_shape=jax.ShapeDtypeStruct((B, OH, OW, OCp), jnp.float32),
        grid_spec=pltpu.PrefetchScalarGridSpec(
            num_scalar_prefetch=0,
            grid=(B,),
            in_specs=[
                pl.BlockSpec((1, Hp, Wp, C), lambda b: (b, 0, 0, 0)),
                # Constant index_map => weight DMA'd once for the whole grid.
                pl.BlockSpec((KH, KW, C, OCp), lambda b: (0, 0, 0, 0)),
            ],
            out_specs=pl.BlockSpec((1, OH, OW, OCp), lambda b: (b, 0, 0, 0)),
            scratch_shapes=[pltpu.VMEM((OH * OW, OCp), jnp.float32)],
        ),
        compiler_params=pltpu.CompilerParams(
            dimension_semantics=("parallel",),
            vmem_limit_bytes=32 * 1024 * 1024,
        ),
        cost_estimate=pl.CostEstimate(
            flops=2 * B * OH * OW * C * KH * KW * OC,
            transcendentals=0,
            bytes_accessed=bytes_accessed,
        ),
    )(x_pad, w_taps)

    out = out[..., :OC]                          # drop lane-padding channels
    return jnp.transpose(out, (0, 3, 1, 2))      # NHWC -> NCHW


# ---------------- Conv2d module ----------------

class Conv2d:
    def __init__(self, in_channels: int, out_channels: int,
                 kernel_size: IntOrPair, stride: IntOrPair = 1,
                 padding: IntOrPair = 0, *, key=None):
        self.in_channels = in_channels
        self.out_channels = out_channels
        self.kernel_height, self.kernel_width = force_pair(kernel_size)
        self.stride_h, self.stride_w = force_pair(stride)
        self.padding_h, self.padding_w = force_pair(padding)

        if key is None:
            key = jax.random.PRNGKey(42)
        # Same init law as the PyTorch module: N * (2*U[0,1) - 1) == U(-N, N)
        N = 1.0 / jnp.sqrt(
            jnp.float32(in_channels * self.kernel_width * self.kernel_height))
        w = jax.random.uniform(
            key,
            (out_channels, in_channels, self.kernel_height, self.kernel_width),
            dtype=jnp.float32)
        self.weight = N * (2.0 * w - 1.0)

    def __call__(self, x: jax.Array) -> jax.Array:
        """x: (B, C, H, W) float32 -> (B, OC, OH, OW) float32."""
        return conv2d_pallas(
            x, self.weight,
            stride=(self.stride_h, self.stride_w),
            padding=(self.padding_h, self.padding_w))


# ---------------- Reference (plain JAX) for sanity check ----------------

def _ref_conv(x, weight, stride, padding):
    return jax.lax.conv_general_dilated(
        x, weight,
        window_strides=stride,
        padding=[(padding[0], padding[0]), (padding[1], padding[1])],
        dimension_numbers=("NCHW", "OIHW", "NCHW"),
    )


if __name__ == "__main__":
    key = jax.random.PRNGKey(0)
    kx, kw_key = jax.random.split(key)

    B, C, H, W = 2, 4, 16, 16
    OC, K, S, P = 8, 3, 1, 1

    x = jax.random.normal(kx, (B, C, H, W), dtype=jnp.float32)

    conv = Conv2d(C, OC, kernel_size=K, stride=S, padding=P, key=kw_key)
    out = jax.block_until_ready(conv(x))

    ref = _ref_conv(x, conv.weight, (S, S), (P, P))
    assert out.shape == ref.shape, (out.shape, ref.shape)
    # bf16 MXU operands with f32 accumulation -> loosened tolerance vs f32 ref.
    assert jnp.allclose(out, ref, atol=2e-2, rtol=2e-2), "mismatch vs reference"

    print("KERNEL_OK")
</pallas_src>

<mosaic_0001>
module attributes {stable_mosaic.version = 11 : i64} {
  func.func @_conv_tap_kernel(%arg0: i32, %arg1: memref<1x18x18x4xbf16, #tpu.memory_space<vmem>>, %arg2: memref<3x3x4x128xbf16, #tpu.memory_space<vmem>>, %arg3: memref<1x16x16x128xf32, #tpu.memory_space<vmem>>, %arg4: memref<256x128xf32, #tpu.memory_space<vmem>>) attributes {dimension_semantics = [#tpu.dimension_semantics<parallel>], iteration_bounds = array<i64: 2>, scalar_prefetch = 0 : i64, scratch_operands = 1 : i64, tpu.core_type = #tpu.core_type<tc>, window_params = [{transform_indices = @transform_0, window_bounds = array<i64: 1, 18, 18, 4>}, {pipeline_mode = #tpu.pipeline_mode<synchronous>, transform_indices = @transform_1, window_bounds = array<i64: 3, 3, 4, 128>}, {transform_indices = @transform_2, window_bounds = array<i64: 1, 16, 16, 128>}]} {
    %cst = arith.constant 0.000000e+00 : f32
    %0 = vector.broadcast %cst : f32 to vector<256x128xf32>
    %c0 = arith.constant 0 : index
    %c0_0 = arith.constant 0 : index
    %1 = vector.load %arg4[%c0, %c0_0] : memref<256x128xf32, #tpu.memory_space<vmem>>, vector<256x128xf32>
    tpu.vector_store %arg4[%c0, %c0_0], %0 {strides = array<i32>} : memref<256x128xf32, #tpu.memory_space<vmem>>, vector<256x128xf32>,
    %c0_1 = arith.constant 0 : index
    %c0_2 = arith.constant 0 : index
    %c0_3 = arith.constant 0 : index
    %c0_4 = arith.constant 0 : index
    %2 = vector.load %arg1[%c0_1, %c0_2, %c0_3, %c0_4] : memref<1x18x18x4xbf16, #tpu.memory_space<vmem>>, vector<1x16x16x4xbf16>
    %3 = vector.shape_cast %2 : vector<1x16x16x4xbf16> to vector<16x16x4xbf16>
    %4 = vector.shape_cast %3 : vector<16x16x4xbf16> to vector<256x4xbf16>
    %c0_5 = arith.constant 0 : index
    %c0_6 = arith.constant 0 : index
    %5 = vector.load %arg4[%c0_5, %c0_6] : memref<256x128xf32, #tpu.memory_space<vmem>>, vector<256x128xf32>
    %c0_7 = arith.constant 0 : index
    %c0_8 = arith.constant 0 : index
    %c0_9 = arith.constant 0 : index
    %c0_10 = arith.constant 0 : index
    %6 = vector.load %arg2[%c0_7, %c0_8, %c0_9, %c0_10] : memref<3x3x4x128xbf16, #tpu.memory_space<vmem>>, vector<1x1x4x128xbf16>
    %7 = vector.shape_cast %6 : vector<1x1x4x128xbf16> to vector<4x128xbf16>
    %cst_11 = arith.constant dense<0.000000e+00> : vector<256x128xf32>
    %8 = tpu.matmul %4, %7, %cst_11 {dimension_numbers = #tpu.dot_dimension_numbers<[1], [0], [0], [1], [0, 0, 1, 1], [], []>} : vector<256x4xbf16>, vector<4x128xbf16>, vector<256x128xf32> -> vector<256x128xf32>
    %9 = arith.addf %5, %8 : vector<256x128xf32>
    %c0_12 = arith.constant 0 : index
    %c0_13 = arith.constant 0 : index
    %10 = vector.load %arg4[%c0_12, %c0_13] : memref<256x128xf32, #tpu.memory_space<vmem>>, vector<256x128xf32>
    tpu.vector_store %arg4[%c0_12, %c0_13], %9 {strides = array<i32>} : memref<256x128xf32, #tpu.memory_space<vmem>>, vector<256x128xf32>,
    %c0_14 = arith.constant 0 : index
    %c0_15 = arith.constant 0 : index
    %c1 = arith.constant 1 : index
    %c0_16 = arith.constant 0 : index
    %11 = vector.load %arg1[%c0_14, %c0_15, %c1, %c0_16] : memref<1x18x18x4xbf16, #tpu.memory_space<vmem>>, vector<1x16x16x4xbf16>
    %12 = vector.shape_cast %11 : vector<1x16x16x4xbf16> to vector<16x16x4xbf16>
    %13 = vector.shape_cast %12 : vector<16x16x4xbf16> to vector<256x4xbf16>
    %c0_17 = arith.constant 0 : index
    %c0_18 = arith.constant 0 : index
    %14 = vector.load %arg4[%c0_17, %c0_18] : memref<256x128xf32, #tpu.memory_space<vmem>>, vector<256x128xf32>
    %c0_19 = arith.constant 0 : index
    %c1_20 = arith.constant 1 : index
    %c0_21 = arith.constant 0 : index
    %c0_22 = arith.constant 0 : index
    %15 = vector.load %arg2[%c0_19, %c1_20, %c0_21, %c0_22] : memref<3x3x4x128xbf16, #tpu.memory_space<vmem>>, vector<1x1x4x128xbf16>
    %16 = vector.shape_cast %15 : vector<1x1x4x128xbf16> to vector<4x128xbf16>
    %cst_23 = arith.constant dense<0.000000e+00> : vector<256x128xf32>
    %17 = tpu.matmul %13, %16, %cst_23 {dimension_numbers = #tpu.dot_dimension_numbers<[1], [0], [0], [1], [0, 0, 1, 1], [], []>} : vector<256x4xbf16>, vector<4x128xbf16>, vector<256x128xf32> -> vector<256x128xf32>
    %18 = arith.addf %14, %17 : vector<256x128xf32>
    %c0_24 = arith.constant 0 : index
    %c0_25 = arith.constant 0 : index
    %19 = vector.load %arg4[%c0_24, %c0_25] : memref<256x128xf32, #tpu.memory_space<vmem>>, vector<256x128xf32>
    tpu.vector_store %arg4[%c0_24, %c0_25], %18 {strides = array<i32>} : memref<256x128xf32, #tpu.memory_space<vmem>>, vector<256x128xf32>,
    %c0_26 = arith.constant 0 : index
    %c0_27 = arith.constant 0 : index
    %c2 = arith.constant 2 : index
    %c0_28 = arith.constant 0 : index
    %20 = vector.load %arg1[%c0_26, %c0_27, %c2, %c0_28] : memref<1x18x18x4xbf16, #tpu.memory_space<vmem>>, vector<1x16x16x4xbf16>
    %21 = vector.shape_cast %20 : vector<1x16x16x4xbf16> to vector<16x16x4xbf16>
    %22 = vector.shape_cast %21 : vector<16x16x4xbf16> to vector<256x4xbf16>
    %c0_29 = arith.constant 0 : index
    %c0_30 = arith.constant 0 : index
    %23 = vector.load %arg4[%c0_29, %c0_30] : memref<256x128xf32, #tpu.memory_space<vmem>>, vector<256x128xf32>
    %c0_31 = arith.constant 0 : index
    %c2_32 = arith.constant 2 : index
    %c0_33 = arith.constant 0 : index
    %c0_34 = arith.constant 0 : index
    %24 = vector.load %arg2[%c0_31, %c2_32, %c0_33, %c0_34] : memref<3x3x4x128xbf16, #tpu.memory_space<vmem>>, vector<1x1x4x128xbf16>
    %25 = vector.shape_cast %24 : vector<1x1x4x128xbf16> to vector<4x128xbf16>
    %cst_35 = arith.constant dense<0.000000e+00> : vector<256x128xf32>
    %26 = tpu.matmul %22, %25, %cst_35 {dimension_numbers = #tpu.dot_dimension_numbers<[1], [0], [0], [1], [0, 0, 1, 1], [], []>} : vector<256x4xbf16>, vector<4x128xbf16>, vector<256x128xf32> -> vector<256x128xf32>
    %27 = arith.addf %23, %26 : vector<256x128xf32>
    %c0_36 = arith.constant 0 : index
    %c0_37 = arith.constant 0 : index
    %28 = vector.load %arg4[%c0_36, %c0_37] : memref<256x128xf32, #tpu.memory_space<vmem>>, vector<256x128xf32>
    tpu.vector_store %arg4[%c0_36, %c0_37], %27 {strides = array<i32>} : memref<256x128xf32, #tpu.memory_space<vmem>>, vector<256x128xf32>,
    %c0_38 = arith.constant 0 : index
    %c1_39 = arith.constant 1 : index
    %c0_40 = arith.constant 0 : index
    %c0_41 = arith.constant 0 : index
    %29 = vector.load %arg1[%c0_38, %c1_39, %c0_40, %c0_41] : memref<1x18x18x4xbf16, #tpu.memory_space<vmem>>, vector<1x16x16x4xbf16>
    %30 = vector.shape_cast %29 : vector<1x16x16x4xbf16> to vector<16x16x4xbf16>
    %31 = vector.shape_cast %30 : vector<16x16x4xbf16> to vector<256x4xbf16>
    %c0_42 = arith.constant 0 : index
    %c0_43 = arith.constant 0 : index
    %32 = vector.load %arg4[%c0_42, %c0_43] : memref<256x128xf32, #tpu.memory_space<vmem>>, vector<256x128xf32>
    %c1_44 = arith.constant 1 : index
    %c0_45 = arith.constant 0 : index
    %c0_46 = arith.constant 0 : index
    %c0_47 = arith.constant 0 : index
    %33 = vector.load %arg2[%c1_44, %c0_45, %c0_46, %c0_47] : memref<3x3x4x128xbf16, #tpu.memory_space<vmem>>, vector<1x1x4x128xbf16>
    %34 = vector.shape_cast %33 : vector<1x1x4x128xbf16> to vector<4x128xbf16>
    %cst_48 = arith.constant dense<0.000000e+00> : vector<256x128xf32>
    %35 = tpu.matmul %31, %34, %cst_48 {dimension_numbers = #tpu.dot_dimension_numbers<[1], [0], [0], [1], [0, 0, 1, 1], [], []>} : vector<256x4xbf16>, vector<4x128xbf16>, vector<256x128xf32> -> vector<256x128xf32>
    %36 = arith.addf %32, %35 : vector<256x128xf32>
    %c0_49 = arith.constant 0 : index
    %c0_50 = arith.constant 0 : index
    %37 = vector.load %arg4[%c0_49, %c0_50] : memref<256x128xf32, #tpu.memory_space<vmem>>, vector<256x128xf32>
    tpu.vector_store %arg4[%c0_49, %c0_50], %36 {strides = array<i32>} : memref<256x128xf32, #tpu.memory_space<vmem>>, vector<256x128xf32>,
    %c0_51 = arith.constant 0 : index
    %c1_52 = arith.constant 1 : index
    %c1_53 = arith.constant 1 : index
    %c0_54 = arith.constant 0 : index
    %38 = vector.load %arg1[%c0_51, %c1_52, %c1_53, %c0_54] : memref<1x18x18x4xbf16, #tpu.memory_space<vmem>>, vector<1x16x16x4xbf16>
    %39 = vector.shape_cast %38 : vector<1x16x16x4xbf16> to vector<16x16x4xbf16>
    %40 = vector.shape_cast %39 : vector<16x16x4xbf16> to vector<256x4xbf16>
    %c0_55 = arith.constant 0 : index
    %c0_56 = arith.constant 0 : index
    %41 = vector.load %arg4[%c0_55, %c0_56] : memref<256x128xf32, #tpu.memory_space<vmem>>, vector<256x128xf32>
    %c1_57 = arith.constant 1 : index
    %c1_58 = arith.constant 1 : index
    %c0_59 = arith.constant 0 : index
    %c0_60 = arith.constant 0 : index
    %42 = vector.load %arg2[%c1_57, %c1_58, %c0_59, %c0_60] : memref<3x3x4x128xbf16, #tpu.memory_space<vmem>>, vector<1x1x4x128xbf16>
    %43 = vector.shape_cast %42 : vector<1x1x4x128xbf16> to vector<4x128xbf16>
    %cst_61 = arith.constant dense<0.000000e+00> : vector<256x128xf32>
    %44 = tpu.matmul %40, %43, %cst_61 {dimension_numbers = #tpu.dot_dimension_numbers<[1], [0], [0], [1], [0, 0, 1, 1], [], []>} : vector<256x4xbf16>, vector<4x128xbf16>, vector<256x128xf32> -> vector<256x128xf32>
    %45 = arith.addf %41, %44 : vector<256x128xf32>
    %c0_62 = arith.constant 0 : index
    %c0_63 = arith.constant 0 : index
    %46 = vector.load %arg4[%c0_62, %c0_63] : memref<256x128xf32, #tpu.memory_space<vmem>>, vector<256x128xf32>
    tpu.vector_store %arg4[%c0_62, %c0_63], %45 {strides = array<i32>} : memref<256x128xf32, #tpu.memory_space<vmem>>, vector<256x128xf32>,
    %c0_64 = arith.constant 0 : index
    %c1_65 = arith.constant 1 : index
    %c2_66 = arith.constant 2 : index
    %c0_67 = arith.constant 0 : index
    %47 = vector.load %arg1[%c0_64, %c1_65, %c2_66, %c0_67] : memref<1x18x18x4xbf16, #tpu.memory_space<vmem>>, vector<1x16x16x4xbf16>
    %48 = vector.shape_cast %47 : vector<1x16x16x4xbf16> to vector<16x16x4xbf16>
    %49 = vector.shape_cast %48 : vector<16x16x4xbf16> to vector<256x4xbf16>
    %c0_68 = arith.constant 0 : index
    %c0_69 = arith.constant 0 : index
    %50 = vector.load %arg4[%c0_68, %c0_69] : memref<256x128xf32, #tpu.memory_space<vmem>>, vector<256x128xf32>
    %c1_70 = arith.constant 1 : index
    %c2_71 = arith.constant 2 : index
    %c0_72 = arith.constant 0 : index
    %c0_73 = arith.constant 0 : index
    %51 = vector.load %arg2[%c1_70, %c2_71, %c0_72, %c0_73] : memref<3x3x4x128xbf16, #tpu.memory_space<vmem>>, vector<1x1x4x128xbf16>
    %52 = vector.shape_cast %51 : vector<1x1x4x128xbf16> to vector<4x128xbf16>
    %cst_74 = arith.constant dense<0.000000e+00> : vector<256x128xf32>
    %53 = tpu.matmul %49, %52, %cst_74 {dimension_numbers = #tpu.dot_dimension_numbers<[1], [0], [0], [1], [0, 0, 1, 1], [], []>} : vector<256x4xbf16>, vector<4x128xbf16>, vector<256x128xf32> -> vector<256x128xf32>
    %54 = arith.addf %50, %53 : vector<256x128xf32>
    %c0_75 = arith.constant 0 : index
    %c0_76 = arith.constant 0 : index
    %55 = vector.load %arg4[%c0_75, %c0_76] : memref<256x128xf32, #tpu.memory_space<vmem>>, vector<256x128xf32>
    tpu.vector_store %arg4[%c0_75, %c0_76], %54 {strides = array<i32>} : memref<256x128xf32, #tpu.memory_space<vmem>>, vector<256x128xf32>,
    %c0_77 = arith.constant 0 : index
    %c2_78 = arith.constant 2 : index
    %c0_79 = arith.constant 0 : index
    %c0_80 = arith.constant 0 : index
    %56 = vector.load %arg1[%c0_77, %c2_78, %c0_79, %c0_80] : memref<1x18x18x4xbf16, #tpu.memory_space<vmem>>, vector<1x16x16x4xbf16>
    %57 = vector.shape_cast %56 : vector<1x16x16x4xbf16> to vector<16x16x4xbf16>
    %58 = vector.shape_cast %57 : vector<16x16x4xbf16> to vector<256x4xbf16>
    %c0_81 = arith.constant 0 : index
    %c0_82 = arith.constant 0 : index
    %59 = vector.load %arg4[%c0_81, %c0_82] : memref<256x128xf32, #tpu.memory_space<vmem>>, vector<256x128xf32>
    %c2_83 = arith.constant 2 : index
    %c0_84 = arith.constant 0 : index
    %c0_85 = arith.constant 0 : index
    %c0_86 = arith.constant 0 : index
    %60 = vector.load %arg2[%c2_83, %c0_84, %c0_85, %c0_86] : memref<3x3x4x128xbf16, #tpu.memory_space<vmem>>, vector<1x1x4x128xbf16>
    %61 = vector.shape_cast %60 : vector<1x1x4x128xbf16> to vector<4x128xbf16>
    %cst_87 = arith.constant dense<0.000000e+00> : vector<256x128xf32>
    %62 = tpu.matmul %58, %61, %cst_87 {dimension_numbers = #tpu.dot_dimension_numbers<[1], [0], [0], [1], [0, 0, 1, 1], [], []>} : vector<256x4xbf16>, vector<4x128xbf16>, vector<256x128xf32> -> vector<256x128xf32>
    %63 = arith.addf %59, %62 : vector<256x128xf32>
    %c0_88 = arith.constant 0 : index
    %c0_89 = arith.constant 0 : index
    %64 = vector.load %arg4[%c0_88, %c0_89] : memref<256x128xf32, #tpu.memory_space<vmem>>, vector<256x128xf32>
    tpu.vector_store %arg4[%c0_88, %c0_89], %63 {strides = array<i32>} : memref<256x128xf32, #tpu.memory_space<vmem>>, vector<256x128xf32>,
    %c0_90 = arith.constant 0 : index
    %c2_91 = arith.constant 2 : index
    %c1_92 = arith.constant 1 : index
    %c0_93 = arith.constant 0 : index
    %65 = vector.load %arg1[%c0_90, %c2_91, %c1_92, %c0_93] : memref<1x18x18x4xbf16, #tpu.memory_space<vmem>>, vector<1x16x16x4xbf16>
    %66 = vector.shape_cast %65 : vector<1x16x16x4xbf16> to vector<16x16x4xbf16>
    %67 = vector.shape_cast %66 : vector<16x16x4xbf16> to vector<256x4xbf16>
    %c0_94 = arith.constant 0 : index
    %c0_95 = arith.constant 0 : index
    %68 = vector.load %arg4[%c0_94, %c0_95] : memref<256x128xf32, #tpu.memory_space<vmem>>, vector<256x128xf32>
    %c2_96 = arith.constant 2 : index
    %c1_97 = arith.constant 1 : index
    %c0_98 = arith.constant 0 : index
    %c0_99 = arith.constant 0 : index
    %69 = vector.load %arg2[%c2_96, %c1_97, %c0_98, %c0_99] : memref<3x3x4x128xbf16, #tpu.memory_space<vmem>>, vector<1x1x4x128xbf16>
    %70 = vector.shape_cast %69 : vector<1x1x4x128xbf16> to vector<4x128xbf16>
    %cst_100 = arith.constant dense<0.000000e+00> : vector<256x128xf32>
    %71 = tpu.matmul %67, %70, %cst_100 {dimension_numbers = #tpu.dot_dimension_numbers<[1], [0], [0], [1], [0, 0, 1, 1], [], []>} : vector<256x4xbf16>, vector<4x128xbf16>, vector<256x128xf32> -> vector<256x128xf32>
    %72 = arith.addf %68, %71 : vector<256x128xf32>
    %c0_101 = arith.constant 0 : index
    %c0_102 = arith.constant 0 : index
    %73 = vector.load %arg4[%c0_101, %c0_102] : memref<256x128xf32, #tpu.memory_space<vmem>>, vector<256x128xf32>
    tpu.vector_store %arg4[%c0_101, %c0_102], %72 {strides = array<i32>} : memref<256x128xf32, #tpu.memory_space<vmem>>, vector<256x128xf32>,
    %c0_103 = arith.constant 0 : index
    %c2_104 = arith.constant 2 : index
    %c2_105 = arith.constant 2 : index
    %c0_106 = arith.constant 0 : index
    %74 = vector.load %arg1[%c0_103, %c2_104, %c2_105, %c0_106] : memref<1x18x18x4xbf16, #tpu.memory_space<vmem>>, vector<1x16x16x4xbf16>
    %75 = vector.shape_cast %74 : vector<1x16x16x4xbf16> to vector<16x16x4xbf16>
    %76 = vector.shape_cast %75 : vector<16x16x4xbf16> to vector<256x4xbf16>
    %c0_107 = arith.constant 0 : index
    %c0_108 = arith.constant 0 : index
    %77 = vector.load %arg4[%c0_107, %c0_108] : memref<256x128xf32, #tpu.memory_space<vmem>>, vector<256x128xf32>
    %c2_109 = arith.constant 2 : index
    %c2_110 = arith.constant 2 : index
    %c0_111 = arith.constant 0 : index
    %c0_112 = arith.constant 0 : index
    %78 = vector.load %arg2[%c2_109, %c2_110, %c0_111, %c0_112] : memref<3x3x4x128xbf16, #tpu.memory_space<vmem>>, vector<1x1x4x128xbf16>
    %79 = vector.shape_cast %78 : vector<1x1x4x128xbf16> to vector<4x128xbf16>
    %cst_113 = arith.constant dense<0.000000e+00> : vector<256x128xf32>
    %80 = tpu.matmul %76, %79, %cst_113 {dimension_numbers = #tpu.dot_dimension_numbers<[1], [0], [0], [1], [0, 0, 1, 1], [], []>} : vector<256x4xbf16>, vector<4x128xbf16>, vector<256x128xf32> -> vector<256x128xf32>
    %81 = arith.addf %77, %80 : vector<256x128xf32>
    %c0_114 = arith.constant 0 : index
    %c0_115 = arith.constant 0 : index
    %82 = vector.load %arg4[%c0_114, %c0_115] : memref<256x128xf32, #tpu.memory_space<vmem>>, vector<256x128xf32>
    tpu.vector_store %arg4[%c0_114, %c0_115], %81 {strides = array<i32>} : memref<256x128xf32, #tpu.memory_space<vmem>>, vector<256x128xf32>,
    %c0_116 = arith.constant 0 : index
    %c0_117 = arith.constant 0 : index
    %83 = vector.load %arg4[%c0_116, %c0_117] : memref<256x128xf32, #tpu.memory_space<vmem>>, vector<256x128xf32>
    %84 = vector.shape_cast %83 : vector<256x128xf32> to vector<1x16x16x128xf32>
    %c0_118 = arith.constant 0 : index
    %c0_119 = arith.constant 0 : index
    %c0_120 = arith.constant 0 : index
    %c0_121 = arith.constant 0 : index
    %85 = vector.load %arg3[%c0_118, %c0_119, %c0_120, %c0_121] : memref<1x16x16x128xf32, #tpu.memory_space<vmem>>, vector<1x16x16x128xf32>
    tpu.vector_store %arg3[%c0_118, %c0_119, %c0_120, %c0_121], %84 {strides = array<i32>} : memref<1x16x16x128xf32, #tpu.memory_space<vmem>>, vector<1x16x16x128xf32>,
    return
  }
  func.func @transform_0(%arg0: i32) -> (i32, i32, i32, i32) {
    %c0_i32 = arith.constant 0 : i32
    %c0_i32_0 = arith.constant 0 : i32
    %c0_i32_1 = arith.constant 0 : i32
    %c0_i32_2 = arith.constant 0 : i32
    return %arg0, %c0_i32, %c0_i32_0, %c0_i32_1 : i32, i32, i32, i32
  }
  func.func @transform_1(%arg0: i32) -> (i32, i32, i32, i32) {
    %c0_i32 = arith.constant 0 : i32
    %c0_i32_0 = arith.constant 0 : i32
    %c0_i32_1 = arith.constant 0 : i32
    %c0_i32_2 = arith.constant 0 : i32
    %c0_i32_3 = arith.constant 0 : i32
    return %c0_i32, %c0_i32_0, %c0_i32_1, %c0_i32_2 : i32, i32, i32, i32
  }
  func.func @transform_2(%arg0: i32) -> (i32, i32, i32, i32) {
    %c0_i32 = arith.constant 0 : i32
    %c0_i32_0 = arith.constant 0 : i32
    %c0_i32_1 = arith.constant 0 : i32
    %c0_i32_2 = arith.constant 0 : i32
    return %arg0, %c0_i32, %c0_i32_0, %c0_i32_1 : i32, i32, i32, i32
  }
}

</mosaic_0001>

<bundles_post_ra>
// kernel: conv2d_pallas.1
= control target key start
LH: loop header
LB: loop body
LE: loop exit
PB: predicated region body
PF: predicated region fallthrough
CT: control target
= control target key end

     0   :  { %s7058_s9 = smov 0   ;;  %s8364_s0 = inlined_call_operand.vmem [shape: bf16[2,18,18,4], index: 0, kind: input, shape index: {}]   ;;  %s8365_s1 = inlined_call_operand.vmem [shape: bf16[3,3,4,128], index: 1, kind: input, shape index: {}]   ;;  %s8366_s2 = inlined_call_operand.vmem [shape: f32[2,16,16,128], index: 2, kind: output, shape index: {}]  }
   0x1 LB: > { %s5639_s10 = sadd.s32 4294967295, %s7041_s9   ;;  %p5643_p0 = scmp.ge.s32.totalorder %s7041_s9, 1  ;;  %s7041_s9 = sphi %s7058_s9, %s12_s9  }
   0x2   : > { %p112_p1 = scmp.lt.s32.totalorder %s7041_s9, 3 }
   0x4   : > { %p113_p2 = pnand %p5643_p0, %p112_p1 }
   0x5   : > { %v241_v0 = vld [vmem:[%s8365_s1] sm:$0x3] (!%p113_p2)  ;;  %vm371_vm0 = vcmask (!%p113_p2), 1041408   ;;  %p134_p3 = scmp.lt.s32.totalorder (!%p113_p2), %s5639_s10, 1  ;;  %v5874_v2 = vld [vmem:[%s8365_s1 + $0x8] sm:$0x3] (!%p113_p2) }
   0x6   : > { %116 = sbr.rel (%p113_p2) target bundleno = 538 (0x21a), region = 28  ;;  %6967 = vmatprep.subr.msk.bf16.mxu1 (!%p113_p2), %vm371_vm0, %v241_v0  ;;  %v373_v1 = vsel (!%p113_p2), %vm371_vm0, %v241_v0, 0  ;;  %v5679_v3 = vld [vmem:[%s8365_s1 + $0x2] sm:$0x3] (!%p113_p2)  ;;  %6971 = vmatprep.subr.msk.bf16.mxu0 (!%p113_p2), %vm371_vm0, %v5874_v2  ;;  %v7081_v4 = vsel (!%p113_p2), %vm371_vm0, %v5874_v2, 0  ;;  %vm322_vm1 = vcmask (!%p113_p2), 31744  }
   0x7   : > { %6404 = vmatpush3.bf16.msra.mxu1 (!%p113_p2), %v373_v1  ;;  %6540 = vmatpush3.bf16.msra.mxu0 (!%p113_p2), %v7081_v4  ;;  %v5971_v5 = vld [vmem:[%s8365_s1 + $0xa] sm:$0x3] (!%p113_p2)  ;;  %vm648_vm2 = vsmask.f32 (!%p113_p2), 3328  ;;  %vm649_vm3 = vsmask.f32 (!%p113_p2), 7440 }
   0x8   : > { %6968 = vmatprep.subr.msk.bf16.mxu1 (!%p113_p2), %vm371_vm0, %v5679_v3  ;;  %6973 = vmatprep.subr.msk.bf16.mxu0 (!%p113_p2), %vm371_vm0, %v5971_v5  ;;  %v7098_v6 = vld [vmem:[%s8365_s1 + $0xc] sm:$0x3] (!%p113_p2)  ;;  %v5728_v7 = vld [vmem:[%s8365_s1 + $0x4] sm:$0x3] (!%p113_p2)  ;;  %v7106_v8 = vld [vmem:[%s8365_s1 + $0xe] sm:$0x3] (!%p113_p2) }
   0x9   : > { %v1166_v10 = vsel (!%p113_p2), %vm371_vm0, %v5679_v3, 0  ;;  %v7112_v12 = vsel (!%p113_p2), %vm371_vm0, %v5971_v5, 0  ;;  %v7118_v14 = vsel (!%p113_p2), %vm371_vm0, %v7098_v6, 0  ;;  %v7122_v15 = vsel (!%p113_p2), %vm371_vm0, %v5728_v7, 0  ;;  %vm7140_vm4 = vmor (!%p113_p2), %vm648_vm2, %vm649_vm3 }
   0xa   : > { %v7126_v16 = vsel (!%p113_p2), %vm371_vm0, %v7106_v8, 0  ;;  %vm1489_vm5 = vcmask (!%p113_p2), 1042432   ;;  %vm1490_vm6 = vcmask (!%p113_p2), 1046532  }
   0xb   : > { %vm7215_vm7 = vmor (!%p113_p2), %vm1489_vm5, %vm1490_vm6 }
   0xd   : > { %s8372_s10 = smov (!%p134_p3, %s5639_s10), 1 }
   0xe   : > { %s6977_s19 = smul.u32 216, %s8372_s10  ;;  %s6249_s7 = sshll.u32 %s8372_s10, 8 }
   0xf   : > { %s8327_s12 = scalar_lea.vmem %s8366_s2, %s6249_s7 }
  0x10   : > { %s7093_s22 = scalar_lea.vmem %s8364_s0, %s6977_s19 }
  0x11   : > { %v6986_v9 = vld [vmem:[%s7093_s22] sm:$0xff]   ;;  %v6987_v11 = vld [vmem:[%s7093_s22 + $0xc] sm:$0xff]   ;;  %v6988_v13 = vld [vmem:[%s7093_s22 + $0x18] sm:$0xff]  }
  0x12   : > { %6405 = vmatprep.mubr.msk.bf16.mxu1 %vm322_vm1, %v6986_v9  ;;  %v5826_v17 = vld [vmem:[%s7093_s22 + $0xc] sm:$0xf]  ;;  %v5827_v18 = vld [vmem:[%s7093_s22 + $0x10] sm:$0xf]  ;;  %v5828_v19 = vld [vmem:[%s7093_s22 + $0x14] sm:$0x1] }
  0x13   : > { %6406 = vmatmul.mubr.msk.bf16.vlgmr.msra.gmra.mrb[0].mxu1 %vm322_vm1, %v6987_v11  ;;  %v6989_v20 = vld [vmem:[%s7093_s22 + $0x24] sm:$0xff]   ;;  %v2434_v21 = vshrl.u32 %v5826_v17, 16  ;;  %v2437_v22 = vshll.u32 %v5826_v17, 16  ;;  %v2443_v23 = vshll.u32 %v5827_v18, 16  ;;  %v2447_v24 = vshrl.u32 %v5827_v18, 16  ;;  %v6990_v42 = vld [vmem:[%s7093_s22 + $0x30] sm:$0xff]  }
  0x14   : > { %6409 = vmatprep.mubr.msk.bf16.mxu1 %vm322_vm1, %v6988_v13  ;;  %6438 = vmatpush3.bf16.msra.mxu1 %v1166_v10  ;;  %v5829_v25 = vld [vmem:[%s7093_s22 + $0x18] sm:$0xf]  ;;  %v2453_v26 = vshll.u32 %v5828_v19, 16  ;;  %v5830_v27 = vld [vmem:[%s7093_s22 + $0x1c] sm:$0xf] }
  0x15   : > { %6969 = vmatprep.subr.msk.bf16.mxu1 %vm371_vm0, %v5728_v7  ;;  %v5831_v28 = vld [vmem:[%s7093_s22 + $0x20] sm:$0x1]  ;;  %v2458_v29 = vshrl.u32 %v5829_v25, 16  ;;  %v2436_v30 = vrot.slane %v2434_v21, 4  ;;  %v2439_v31 = vrot.slane %v2437_v22, 5  ;;  %v2445_v32 = vrot.slane %v2443_v23, 5 }
  0x16   : > { %v2449_v33 = vrot.slane %v2447_v24, 4  ;;  %v2455_v34 = vrot.slane %v2453_v26, 5  ;;  %v2461_v36 = vshll.u32 %v5829_v25, 16  ;;  %v2467_v37 = vshll.u32 %v5830_v27, 16  ;;  %v5832_v46 = vld [vmem:[%s7093_s22 + $0x24] sm:$0xf] }
  0x17   : > { %v2460_v35 = vrot.slane %v2458_v29, 4  ;;  %v2440_v38 = vor.u32 %v2439_v31, %v2436_v30  ;;  %v2471_v40 = vshrl.u32 %v5830_v27, 16  ;;  %v2477_v41 = vshll.u32 %v5831_v28, 16  ;;  %v5833_v51 = vld [vmem:[%s7093_s22 + $0x28] sm:$0xf]  ;;  %v6991_v60 = vld [vmem:[%s7093_s22 + $0x3c] sm:$0xff]  }
  0x18   : > { %v2450_v39 = vor.u32 %v2449_v33, %v2445_v32  ;;  %v2463_v44 = vrot.slane %v2461_v36, 5  ;;  %v2469_v45 = vrot.slane %v2467_v37, 5  ;;  %v5834_v53 = vld [vmem:[%s7093_s22 + $0x2c] sm:$0x1]  ;;  %v2482_v54 = vshrl.u32 %v5832_v46, 16 }
  0x19   : > { %v2441_v47 = vrot.slane %v2440_v38, 4  ;;  %v2473_v49 = vrot.slane %v2471_v40, 4  ;;  %v2479_v50 = vrot.slane %v2477_v41, 5  ;;  %v2485_v55 = vshll.u32 %v5832_v46, 16  ;;  %v5835_v62 = vld [vmem:[%s7093_s22 + $0x30] sm:$0xf] }
  0x1a   : > { %v2451_v48 = vrot.slane %v2450_v39, 4  ;;  %v2464_v52 = vor.u32 %v2463_v44, %v2460_v35  ;;  %v2491_v56 = vshll.u32 %v5833_v51, 16  ;;  %v2495_v61 = vshrl.u32 %v5833_v51, 16  ;;  %v5836_v63 = vld [vmem:[%s7093_s22 + $0x34] sm:$0xf]  ;;  %v6992_v7 = vld [vmem:[%s7093_s22 + $0x48] sm:$0xff]  }
  0x1b   : > { %6410 = vmatmul.mubr.msk.bf16.gmra.mrb[4].mxu1 %vm322_vm1, %v6989_v20  ;;  %v2446_v57 = vsel %vm7140_vm4, %v2441_v47, %v2445_v32  ;;  %v2474_v59 = vor.u32 %v2473_v49, %v2469_v45  ;;  %v2484_v2 = vrot.slane %v2482_v54, 4  ;;  %v2487_v3 = vrot.slane %v2485_v55, 5  ;;  %v5837_v5 = vld [vmem:[%s7093_s22 + $0x38] sm:$0x1]  ;;  %v5838_v25 = vld [vmem:[%s7093_s22 + $0x3c] sm:$0xf] }
  0x1c   : > { %6413 = vmatprep.mubr.msk.bf16.mxu1 %vm322_vm1, %v6990_v42  ;;  %v2456_v58 = vsel %vm7140_vm4, %v2451_v48, %v2455_v34  ;;  %v2465_v1 = vrot.slane %v2464_v52, 4  ;;  %v2493_v10 = vrot.slane %v2491_v56, 5  ;;  %v2497_v11 = vrot.slane %v2495_v61, 4  ;;  %v5839_v30 = vld [vmem:[%s7093_s22 + $0x40] sm:$0xf]  ;;  %v6993_v49 = vld [vmem:[%s7093_s22 + $0x54] sm:$0xff]  }
  0x1d   : > { %v5875_v0 = vcombine.low %v2446_v57, %v2456_v58  ;;  %v2475_v9 = vrot.slane %v2474_v59, 4  ;;  %v2501_v13 = vshll.u32 %v5834_v53, 16  ;;  %v2488_v18 = vor.u32 %v2487_v3, %v2484_v2  ;;  %v5840_v37 = vld [vmem:[%s7093_s22 + $0x44] sm:$0x1]  ;;  %v5841_v40 = vld [vmem:[%s7093_s22 + $0x48] sm:$0xf] }
  0x1e   : > { %v2470_v17 = vsel %vm7140_vm4, %v2465_v1, %v2469_v45  ;;  %v2506_v19 = vshrl.u32 %v5835_v62, 16  ;;  %v2509_v20 = vshll.u32 %v5835_v62, 16  ;;  %v2498_v22 = vor.u32 %v2497_v11, %v2493_v10  ;;  %v5842_v46 = vld [vmem:[%s7093_s22 + $0x4c] sm:$0xf]  ;;  %v5843_v52 = vld [vmem:[%s7093_s22 + $0x50] sm:$0x1] }
  0x1f   : > { %6541 = vmatprep.mubr.msk.bf16.mxu0 %vm322_vm1, %v5875_v0  ;;  %v2480_v21 = vsel %vm7140_vm4, %v2475_v9, %v2479_v50  ;;  %v2503_v23 = vrot.slane %v2501_v13, 5  ;;  %v2515_v24 = vshll.u32 %v5836_v63, 16  ;;  %v2489_v27 = vrot.slane %v2488_v18, 4  ;;  %v6994_v56 = vld [vmem:[%s7093_s22 + $0x60] sm:$0xff]   ;;  %v5845_v13 = vld [vmem:[%s7093_s22 + $0x58] sm:$0xf] }
  0x20   : > { %v5876_v26 = vcombine.low %v2470_v17, %v2480_v21  ;;  %v2508_v28 = vrot.slane %v2506_v19, 4  ;;  %v2511_v29 = vrot.slane %v2509_v20, 5  ;;  %v2499_v31 = vrot.slane %v2498_v22, 4  ;;  %v5846_v21 = vld [vmem:[%s7093_s22 + $0x5c] sm:$0x1] }
  0x21   : > { %v2517_v32 = vrot.slane %v2515_v24, 5  ;;  %v2519_v33 = vshrl.u32 %v5836_v63, 16  ;;  %v2525_v34 = vshll.u32 %v5837_v5, 16  ;;  %v2494_v35 = vsel %vm7140_vm4, %v2489_v27, %v2493_v10  ;;  %v5844_v5 = vld [vmem:[%s7093_s22 + $0x54] sm:$0xf] }
  0x22   : > { %6542 = vmatmul.mubr.msk.bf16.vlgmr.msra.gmra.mrb[0].mxu0 %vm322_vm1, %v5876_v26  ;;  %v2512_v36 = vor.u32 %v2511_v29, %v2508_v28  ;;  %v2530_v38 = vshrl.u32 %v5838_v25, 16  ;;  %v2533_v39 = vshll.u32 %v5838_v25, 16  ;;  %v2504_v41 = vsel %vm7140_vm4, %v2499_v31, %v2503_v23  ;;  %v5847_v22 = vld [vmem:[%s7093_s22 + $0x60] sm:$0xf]  ;;  %v5848_v27 = vld [vmem:[%s7093_s22 + $0x64] sm:$0xf] }
  0x23   : > { %6414 = vmatmul.mubr.msk.bf16.gmra.mrb[8].mxu1 %vm322_vm1, %v6991_v60  ;;  %6574 = vmatpush3.bf16.msra.mxu0 %v7112_v12  ;;  %v2521_v42 = vrot.slane %v2519_v33, 4  ;;  %v2527_v44 = vrot.slane %v2525_v34, 5  ;;  %v2539_v45 = vshll.u32 %v5839_v30, 16  ;;  %v5877_v47 = vcombine.low %v2494_v35, %v2504_v41 }
  0x24   : > { %6417 = vmatprep.mubr.msk.bf16.mxu1 %vm322_vm1, %v6992_v7  ;;  %v2513_v48 = vrot.slane %v2512_v36, 4  ;;  %v2532_v50 = vrot.slane %v2530_v38, 4  ;;  %v2535_v51 = vrot.slane %v2533_v39, 5  ;;  %6974 = vmatprep.subr.msk.bf16.mxu0 %vm371_vm0, %v7098_v6  ;;  %v2543_v12 = vshrl.u32 %v5839_v30, 16  ;;  %v6995_v30 = vld [vmem:[%s7093_s22 + $0x6c] sm:$0xff]   ;;  %v6996_v38 = vld [vmem:[%s7093_s22 + $0x78] sm:$0xff]  }
  0x25   : > { %v2522_v53 = vor.u32 %v2521_v42, %v2517_v32  ;;  %v2541_v54 = vrot.slane %v2539_v45, 5  ;;  %v2549_v55 = vshll.u32 %v5840_v37, 16  ;;  %6545 = vmatprep.mubr.msk.bf16.mxu0 %vm322_vm1, %v5877_v47  ;;  %v2554_v59 = vshrl.u32 %v5841_v40, 16  ;;  %v5849_v37 = vld [vmem:[%s7093_s22 + $0x68] sm:$0x1] }
  0x26   : > { %v2518_v57 = vsel %vm7140_vm4, %v2513_v48, %v2517_v32  ;;  %v2536_v58 = vor.u32 %v2535_v51, %v2532_v50  ;;  %v2557_v60 = vshll.u32 %v5841_v40, 16  ;;  %v2545_v62 = vrot.slane %v2543_v12, 4 }
  0x27   : > { %v2523_v61 = vrot.slane %v2522_v53, 4  ;;  %v2551_v63 = vrot.slane %v2549_v55, 5  ;;  %v2563_v0 = vshll.u32 %v5842_v46, 16  ;;  %v2556_v1 = vrot.slane %v2554_v59, 4  ;;  %v5911_v59 = vld [vmem:[%s7093_s22 + $0x1c] sm:$0xf] }
  0x28   : > { %v2537_v6 = vrot.slane %v2536_v58, 4  ;;  %v2559_v2 = vrot.slane %v2557_v60, 5  ;;  %v2567_v3 = vshrl.u32 %v5842_v46, 16  ;;  %v2546_v9 = vor.u32 %v2545_v62, %v2541_v54  ;;  %v5910_v58 = vld [vmem:[%s7093_s22 + $0x18] sm:$0xe] }
  0x29   : > { %v2528_v7 = vsel %vm7140_vm4, %v2523_v61, %v2527_v44  ;;  %v2565_v10 = vrot.slane %v2563_v0, 5  ;;  %v2573_v11 = vshll.u32 %v5843_v52, 16  ;;  %v2578_v25 = vshrl.u32 %v5844_v5, 16  ;;  %v5907_v44 = vld [vmem:[%s7093_s22 + $0xc] sm:$0xe] }
  0x2a   : > { %v5878_v17 = vcombine.low %v2518_v57, %v2528_v7  ;;  %v2542_v18 = vsel %vm7140_vm4, %v2537_v6, %v2541_v54  ;;  %v2560_v19 = vor.u32 %v2559_v2, %v2556_v1  ;;  %v2569_v20 = vrot.slane %v2567_v3, 4  ;;  %v5909_v54 = vld [vmem:[%s7093_s22 + $0x14] sm:$0x1]  ;;  %v5912_v6 = vld [vmem:[%s7093_s22 + $0x20] sm:$0x1]  ;;  %v6997_v3 = vld [vmem:[%s7093_s22 + $0x84] sm:$0xff]  }
  0x2b   : > { %6418 = vmatmul.mubr.msk.bf16.gmra.mrb[12].mxu1 %vm322_vm1, %v6993_v49  ;;  %v2547_v23 = vrot.slane %v2546_v9, 4  ;;  %v2575_v24 = vrot.slane %v2573_v11, 5  ;;  %v2581_v26 = vshll.u32 %v5844_v5, 16  ;;  %v2587_v31 = vshll.u32 %v5845_v13, 16  ;;  %v5908_v49 = vld [vmem:[%s7093_s22 + $0x10] sm:$0xf] }
  0x2c   : > { %6421 = vmatprep.mubr.msk.bf16.mxu1 %vm322_vm1, %v6994_v56  ;;  %6546 = vmatmul.mubr.msk.bf16.gmra.mrb[4].mxu0 %vm322_vm1, %v5878_v17  ;;  %v2561_v28 = vrot.slane %v2560_v19, 4  ;;  %v2570_v29 = vor.u32 %v2569_v20, %v2565_v10  ;;  %v2591_v32 = vshrl.u32 %v5845_v13, 16  ;;  %v2580_v34 = vrot.slane %v2578_v25, 4 }
  0x2d   : > { %v2552_v33 = vsel %vm7140_vm4, %v2547_v23, %v2551_v63  ;;  %v2583_v35 = vrot.slane %v2581_v26, 5  ;;  %v2597_v36 = vshll.u32 %v5846_v21, 16  ;;  %v2589_v42 = vrot.slane %v2587_v31, 5  ;;  %v5913_v21 = vld [vmem:[%s7093_s22 + $0x24] sm:$0xe]  ;;  %v6998_v26 = vld [vmem:[%s7093_s22 + $0x90] sm:$0xff]  }
  0x2e   : > { %v5879_v39 = vcombine.low %v2542_v18, %v2552_v33  ;;  %v2566_v40 = vsel %vm7140_vm4, %v2561_v28, %v2565_v10  ;;  %v2571_v41 = vrot.slane %v2570_v29, 4  ;;  %v2593_v46 = vrot.slane %v2591_v32, 4 }
  0x2f   : > { %v2584_v45 = vor.u32 %v2583_v35, %v2580_v34  ;;  %v2599_v47 = vrot.slane %v2597_v36, 5  ;;  %v2602_v48 = vshrl.u32 %v5847_v22, 16  ;;  %v2605_v51 = vshll.u32 %v5847_v22, 16  ;;  %v5916_v36 = vld [vmem:[%s7093_s22 + $0x30] sm:$0xe] }
  0x30   : > { %6549 = vmatprep.mubr.msk.bf16.mxu0 %vm322_vm1, %v5879_v39  ;;  %v2576_v50 = vsel %vm7140_vm4, %v2571_v41, %v2575_v24  ;;  %v2611_v52 = vshll.u32 %v5848_v27, 16  ;;  %v2615_v53 = vshrl.u32 %v5848_v27, 16  ;;  %v2594_v56 = vor.u32 %v2593_v46, %v2589_v42  ;;  %v5914_v27 = vld [vmem:[%s7093_s22 + $0x28] sm:$0xf] }
  0x31   : > { %v5880_v12 = vcombine.low %v2566_v40, %v2576_v50  ;;  %v2585_v55 = vrot.slane %v2584_v45, 4  ;;  %v2604_v57 = vrot.slane %v2602_v48, 4  ;;  %v2607_v60 = vrot.slane %v2605_v51, 5  ;;  %v5919_v50 = vld [vmem:[%s7093_s22 + $0x3c] sm:$0xe] }
  0x32   : > { %v2613_v61 = vrot.slane %v2611_v52, 5  ;;  %v2617_v62 = vrot.slane %v2615_v53, 4  ;;  %v2621_v63 = vshll.u32 %v5849_v37, 16  ;;  %v2595_v2 = vrot.slane %v2594_v56, 4  ;;  %v5917_v37 = vld [vmem:[%s7093_s22 + $0x34] sm:$0xf] }
  0x33   : > { %6422 = vmatmul.mubr.msk.bf16.gmra.mrb[16].mxu1 %vm322_vm1, %v6995_v30  ;;  %v2590_v1 = vsel %vm7140_vm4, %v2585_v55, %v2589_v42  ;;  %v5955_v5 = vrot.slane %v5907_v44, 9  ;;  %v3273_v7 = vrot.slane %v5908_v49, 5  ;;  %v2608_v9 = vor.u32 %v2607_v60, %v2604_v57  ;;  %v5915_v30 = vld [vmem:[%s7093_s22 + $0x2c] sm:$0x1]  ;;  %v5920_v51 = vld [vmem:[%s7093_s22 + $0x40] sm:$0xf] }
  0x34   : > { %6425 = vmatprep.mubr.msk.bf16.mxu1 %vm322_vm1, %v6996_v38  ;;  %6550 = vmatmul.mubr.msk.bf16.gmra.mrb[8].mxu0 %vm322_vm1, %v5880_v12  ;;  %v2618_v10 = vor.u32 %v2617_v62, %v2613_v61  ;;  %v2623_v11 = vrot.slane %v2621_v63, 5  ;;  %v3276_v13 = vrot.slane %v5909_v54, 5  ;;  %v2600_v17 = vsel %vm7140_vm4, %v2595_v2, %v2599_v47  ;;  %v5918_v38 = vld [vmem:[%s7093_s22 + $0x38] sm:$0x1]  ;;  %v6999_v52 = vld [vmem:[%s7093_s22 + $0x9c] sm:$0xff]  }
  0x35   : > { %v3274_v18 = vsel %vm7215_vm7, %v5955_v5, %v3273_v7  ;;  %v3275_v19 = vrot.slane %v3273_v7, 4  ;;  %v5956_v20 = vrot.slane %v5910_v58, 9  ;;  %v5881_v22 = vcombine.low %v2590_v1, %v2600_v17  ;;  %v5921_v55 = vld [vmem:[%s7093_s22 + $0x44] sm:$0x1]  ;;  %v5922_v56 = vld [vmem:[%s7093_s22 + $0x48] sm:$0xe] }
  0x36   : > { %v2609_v23 = vrot.slane %v2608_v9, 4  ;;  %v2619_v24 = vrot.slane %v2618_v10, 4  ;;  %v3280_v25 = vrot.slane %v5911_v59, 5  ;;  %v3283_v29 = vrot.slane %v5912_v6, 5  ;;  %v7000_v58 = vld [vmem:[%s7093_s22 + $0xa8] sm:$0xff]  }
  0x37   : > { %v3277_v28 = vsel %vm7215_vm7, %v3275_v19, %v3276_v13  ;;  %v5957_v31 = vrot.slane %v5913_v21, 9  ;;  %v3287_v32 = vrot.slane %v5914_v27, 5  ;;  %6553 = vmatprep.mubr.msk.bf16.mxu0 %vm322_vm1, %v5881_v22  ;;  %v3290_v44 = vrot.slane %v5915_v30, 5  ;;  %v5923_v62 = vld [vmem:[%s7093_s22 + $0x4c] sm:$0xf] }
  0x38   : > { %v2614_v33 = vsel %vm7140_vm4, %v2609_v23, %v2613_v61  ;;  %v2624_v34 = vsel %vm7140_vm4, %v2619_v24, %v2623_v11  ;;  %v5972_v35 = vcombine.low %v3274_v18, %v3277_v28  ;;  %v3281_v40 = vsel %vm7215_vm7, %v5956_v20, %v3280_v25  ;;  %v5924_v1 = vld [vmem:[%s7093_s22 + $0x50] sm:$0x1]  ;;  %v600_v5 = vld [vmem:[%s7093_s22] sm:$0xf]  ;;  %v601_v13 = vld [vmem:[%s7093_s22 + $0x4] sm:$0xf] }
  0x39   : > { %v5882_v39 = vcombine.low %v2614_v33, %v2624_v34  ;;  %v3282_v41 = vrot.slane %v3280_v25, 4  ;;  %v3289_v42 = vrot.slane %v3287_v32, 4  ;;  %v5958_v45 = vrot.slane %v5916_v36, 9  ;;  %v602_v17 = vld [vmem:[%s7093_s22 + $0x8] sm:$0x1] }
  0x3a   : > { %v3294_v46 = vrot.slane %v5917_v37, 5  ;;  %v3297_v47 = vrot.slane %v5918_v38, 5  ;;  %v3288_v49 = vsel %vm7215_vm7, %v5957_v31, %v3287_v32  ;;  %v5959_v59 = vrot.slane %v5919_v50, 9  ;;  %v603_v22 = vld [vmem:[%s7093_s22 + $0xc] sm:$0xf] }
  0x3b   : > { %6426 = vmatmul.mubr.msk.bf16.gmra.mrb[20].mxu1 %vm322_vm1, %v6997_v3  ;;  %v3284_v48 = vsel %vm7215_vm7, %v3282_v41, %v3283_v29  ;;  %v3291_v53 = vsel %vm7215_vm7, %v3289_v42, %v3290_v44  ;;  %v3301_v60 = vrot.slane %v5920_v51, 5  ;;  %v3304_v61 = vrot.slane %v5921_v55, 5  ;;  %v604_v27 = vld [vmem:[%s7093_s22 + $0x10] sm:$0xf]  ;;  %v605_v32 = vld [vmem:[%s7093_s22 + $0x14] sm:$0x1] }
  0x3c   : > { %6429 = vmatprep.mubr.msk.bf16.mxu1 %vm322_vm1, %v6998_v26  ;;  %6554 = vmatmul.mubr.msk.bf16.gmra.mrb[12].mxu0 %vm322_vm1, %v5882_v39  ;;  %v7258_v54 = vsel %vm7215_vm7, %v5958_v45, %v3294_v46  ;;  %v3296_v12 = vrot.slane %v3294_v46, 4  ;;  %v5973_v57 = vcombine.low %v3281_v40, %v3284_v48  ;;  %v5974_v63 = vcombine.low %v3288_v49, %v3291_v53  ;;  %v5925_v33 = vld [vmem:[%s7093_s22 + $0x54] sm:$0xe]  ;;  %v5926_v38 = vld [vmem:[%s7093_s22 + $0x58] sm:$0xf] }
  0x3d   : > { %6575 = vmatprep.mubr.msk.bf16.mxu0 %vm322_vm1, %v5972_v35  ;;  %v5960_v2 = vrot.slane %v5922_v56, 9  ;;  %v3308_v3 = vrot.slane %v5923_v62, 5  ;;  %v7275_v9 = vsel %vm7215_vm7, %v5959_v59, %v3301_v60  ;;  %v3303_v10 = vrot.slane %v3301_v60, 4  ;;  %v5927_v44 = vld [vmem:[%s7093_s22 + $0x5c] sm:$0x1]  ;;  %v7001_v45 = vld [vmem:[%s7093_s22 + $0xb4] sm:$0xff]  }
  0x3e   : > { %v7267_v6 = vsel %vm7215_vm7, %v3296_v12, %v3297_v47  ;;  %v3311_v11 = vrot.slane %v5924_v1, 5  ;;  %v652_v20 = vshrl.u32 %v600_v5, 16  ;;  %v655_v21 = vshll.u32 %v600_v5, 16  ;;  %v5928_v50 = vld [vmem:[%s7093_s22 + $0x60] sm:$0xe] }
  0x3f   : > { %v5975_v7 = vcombine.low %v7258_v54, %v7267_v6  ;;  %v7281_v18 = vsel %vm7215_vm7, %v5960_v2, %v3308_v3  ;;  %v3310_v19 = vrot.slane %v3308_v3, 4  ;;  %v7287_v23 = vsel %vm7215_vm7, %v3303_v10, %v3304_v61  ;;  %v5929_v55 = vld [vmem:[%s7093_s22 + $0x64] sm:$0xf]  ;;  %v5930_v59 = vld [vmem:[%s7093_s22 + $0x68] sm:$0x1] }
  0x40   : > { %v661_v24 = vshll.u32 %v601_v13, 16  ;;  %v665_v25 = vshrl.u32 %v601_v13, 16  ;;  %v671_v26 = vshll.u32 %v602_v17, 16  ;;  %v5976_v28 = vcombine.low %v7275_v9, %v7287_v23  ;;  %v606_v1 = vld [vmem:[%s7093_s22 + $0x18] sm:$0xf] }
  0x41   : > { %v7295_v29 = vsel %vm7215_vm7, %v3310_v19, %v3311_v11  ;;  %v654_v30 = vrot.slane %v652_v20, 4  ;;  %v657_v31 = vrot.slane %v655_v21, 5  ;;  %v676_v40 = vshrl.u32 %v603_v22, 16  ;;  %v607_v19 = vld [vmem:[%s7093_s22 + $0x1c] sm:$0xf] }
  0x42   : > { %v5977_v34 = vcombine.low %v7281_v18, %v7295_v29  ;;  %v663_v35 = vrot.slane %v661_v24, 5  ;;  %v667_v36 = vrot.slane %v665_v25, 4  ;;  %v673_v37 = vrot.slane %v671_v26, 5  ;;  %v611_v9 = vld [vmem:[%s7093_s22 + $0x2c] sm:$0x1] }
  0x43   : > { %6430 = vmatmul.mubr.msk.bf16.gmra.mrb[24].mxu1 %vm322_vm1, %v6999_v52  ;;  %v658_v39 = vor.u32 %v657_v31, %v654_v30  ;;  %v679_v41 = vshll.u32 %v603_v22, 16  ;;  %v685_v42 = vshll.u32 %v604_v27, 16  ;;  %v689_v47 = vshrl.u32 %v604_v27, 16  ;;  %v608_v22 = vld [vmem:[%s7093_s22 + $0x20] sm:$0x1] }
  0x44   : > { %6433 = vmatprep.mubr.msk.bf16.mxu1 %vm322_vm1, %v7000_v58  ;;  %6576 = vmatmul.mubr.msk.bf16.vlgmr.msra.gmra.mrb[0].mxu0 %vm322_vm1, %v5973_v57  ;;  %v668_v46 = vor.u32 %v667_v36, %v663_v35  ;;  %v695_v48 = vshll.u32 %v605_v32, 16  ;;  %v5961_v49 = vrot.slane %v5925_v33, 9  ;;  %v678_v52 = vrot.slane %v676_v40, 4  ;;  %v609_v32 = vld [vmem:[%s7093_s22 + $0x24] sm:$0xf] }
  0x45   : > { %6608 = vmatpush3.bf16.msra.mxu0 %v7118_v14  ;;  %6579 = vmatprep.mubr.msk.bf16.mxu0 %vm322_vm1, %v5974_v63  ;;  %v659_v51 = vrot.slane %v658_v39, 4  ;;  %v681_v53 = vrot.slane %v679_v41, 5  ;;  %v687_v12 = vrot.slane %v685_v42, 5  ;;  %v691_v14 = vrot.slane %v689_v47, 4  ;;  %v5931_v23 = vld [vmem:[%s7093_s22 + $0x6c] sm:$0xe] }
  0x46   : > { %6975 = vmatprep.subr.msk.bf16.mxu0 %vm371_vm0, %v7106_v8  ;;  %v669_v56 = vrot.slane %v668_v46, 4  ;;  %v697_v57 = vrot.slane %v695_v48, 5  ;;  %v3315_v58 = vrot.slane %v5926_v38, 5  ;;  %v3318_v62 = vrot.slane %v5927_v44, 5  ;;  %v5932_v44 = vld [vmem:[%s7093_s22 + $0x70] sm:$0xf] }
  0x47   : > { %v664_v60 = vsel %vm7140_vm4, %v659_v51, %v663_v35  ;;  %v682_v61 = vor.u32 %v681_v53, %v678_v52  ;;  %v5962_v63 = vrot.slane %v5928_v50, 9  ;;  %v692_v8 = vor.u32 %v691_v14, %v687_v12  ;;  %v610_v35 = vld [vmem:[%s7093_s22 + $0x28] sm:$0xf]  ;;  %v5934_v50 = vld [vmem:[%s7093_s22 + $0x78] sm:$0xe] }
  0x48   : > { %v674_v2 = vsel %vm7140_vm4, %v669_v56, %v673_v37  ;;  %v7320_v3 = vsel %vm7215_vm7, %v5961_v49, %v3315_v58  ;;  %v3317_v5 = vrot.slane %v3315_v58, 4  ;;  %v3322_v13 = vrot.slane %v5929_v55, 5  ;;  %v5935_v55 = vld [vmem:[%s7093_s22 + $0x7c] sm:$0xf] }
  0x49   : > { %v5680_v10 = vcombine.low %v664_v60, %v674_v2  ;;  %v683_v11 = vrot.slane %v682_v61, 4  ;;  %v3325_v17 = vrot.slane %v5930_v59, 5  ;;  %v693_v20 = vrot.slane %v692_v8, 4  ;;  %v5936_v59 = vld [vmem:[%s7093_s22 + $0x80] sm:$0x1] }
  0x4a   : > { %v3319_v21 = vsel %vm7215_vm7, %v3317_v5, %v3318_v62  ;;  %v700_v24 = vshrl.u32 %v606_v1, 16  ;;  %v703_v25 = vshll.u32 %v606_v1, 16  ;;  %v7336_v30 = vsel %vm7215_vm7, %v5962_v63, %v3322_v13  ;;  %v612_v1 = vld [vmem:[%s7093_s22 + $0x30] sm:$0xf] }
  0x4b   : > { %6434 = vmatmul.mubr.msk.bf16.gmra.mrb[28].mxu1 %vm322_vm1, %v7001_v45  ;;  %v688_v26 = vsel %vm7140_vm4, %v683_v11, %v687_v12  ;;  %v5978_v27 = vcombine.low %v7320_v3, %v3319_v21  ;;  %v3324_v31 = vrot.slane %v3322_v13, 4  ;;  %v698_v54 = vsel %vm7140_vm4, %v693_v20, %v697_v57  ;;  %v5933_v45 = vld [vmem:[%s7093_s22 + $0x74] sm:$0x1] }
  0x4c   : > { %6580 = vmatmul.mubr.msk.bf16.gmra.mrb[4].mxu0 %vm322_vm1, %v5975_v7  ;;  %6439 = vmatprep.mubr.msk.bf16.mxu1 %vm322_vm1, %v5680_v10  ;;  %v702_v6 = vrot.slane %v700_v24, 4  ;;  %v705_v7 = vrot.slane %v703_v25, 5  ;;  %v709_v33 = vshll.u32 %v607_v19, 16  ;;  %v5681_v36 = vcombine.low %v688_v26, %v698_v54  ;;  %v614_v25 = vld [vmem:[%s7093_s22 + $0x38] sm:$0x1] }
  0x4d   : > { %6583 = vmatprep.mubr.msk.bf16.mxu0 %vm322_vm1, %v5976_v28  ;;  %v7348_v37 = vsel %vm7215_vm7, %v3324_v31, %v3325_v17  ;;  %v713_v38 = vshrl.u32 %v607_v19, 16  ;;  %v719_v39 = vshll.u32 %v608_v22, 16  ;;  %v724_v42 = vshrl.u32 %v609_v32, 16  ;;  %v615_v26 = vld [vmem:[%s7093_s22 + $0x3c] sm:$0xf] }
  0x4e   : > { %v5979_v28 = vcombine.low %v7336_v30, %v7348_v37  ;;  %v706_v40 = vor.u32 %v705_v7, %v702_v6  ;;  %v711_v41 = vrot.slane %v709_v33, 5  ;;  %v727_v48 = vshll.u32 %v609_v32, 16 }
  0x4f   : > { %v715_v46 = vrot.slane %v713_v38, 4  ;;  %v721_v47 = vrot.slane %v719_v39, 5  ;;  %v733_v49 = vshll.u32 %v610_v35, 16  ;;  %v726_v52 = vrot.slane %v724_v42, 4 }
  0x50   : > { %v707_v51 = vrot.slane %v706_v40, 4  ;;  %v737_v53 = vshrl.u32 %v610_v35, 16  ;;  %v743_v12 = vshll.u32 %v611_v9, 16  ;;  %v729_v14 = vrot.slane %v727_v48, 5 }
  0x51   : > { %v716_v56 = vor.u32 %v715_v46, %v711_v41  ;;  %v735_v57 = vrot.slane %v733_v49, 5  ;;  %v5963_v58 = vrot.slane %v5931_v23, 9  ;;  %v3329_v63 = vrot.slane %v5932_v44, 5  ;;  %v617_v23 = vld [vmem:[%s7093_s22 + $0x44] sm:$0x1] }
  0x52   : > { %v712_v60 = vsel %vm7140_vm4, %v707_v51, %v711_v41  ;;  %v739_v61 = vrot.slane %v737_v53, 4  ;;  %v745_v62 = vrot.slane %v743_v12, 5  ;;  %v730_v8 = vor.u32 %v729_v14, %v726_v52  ;;  %v5937_v41 = vld [vmem:[%s7093_s22 + $0x84] sm:$0xe] }
  0x53   : > { %6440 = vmatmul.mubr.msk.bf16.vlgmr.msra.gmra.mrb[0].mxu1 %vm322_vm1, %v5681_v36  ;;  %v717_v2 = vrot.slane %v716_v56, 4  ;;  %v3332_v3 = vrot.slane %v5933_v45, 5  ;;  %v5964_v5 = vrot.slane %v5934_v50, 9  ;;  %v3330_v10 = vsel %vm7215_vm7, %v5963_v58, %v3329_v63  ;;  %v616_v36 = vld [vmem:[%s7093_s22 + $0x40] sm:$0xf] }
  0x54   : > { %6472 = vmatpush3.bf16.msra.mxu1 %v7122_v15  ;;  %6584 = vmatmul.mubr.msk.bf16.gmra.mrb[8].mxu0 %vm322_vm1, %v5977_v34  ;;  %v740_v15 = vor.u32 %v739_v61, %v735_v57  ;;  %v3331_v11 = vrot.slane %v3329_v63, 4  ;;  %v3336_v13 = vrot.slane %v5935_v55, 5  ;;  %v731_v18 = vrot.slane %v730_v8, 4  ;;  %v613_v34 = vld [vmem:[%s7093_s22 + $0x34] sm:$0xf] }
  0x55   : > { %6587 = vmatprep.mubr.msk.bf16.mxu0 %vm322_vm1, %v5978_v27  ;;  %v722_v17 = vsel %vm7140_vm4, %v717_v2, %v721_v47  ;;  %v3339_v29 = vrot.slane %v5936_v59, 5  ;;  %v748_v19 = vshrl.u32 %v612_v1, 16  ;;  %v751_v7 = vshll.u32 %v612_v1, 16  ;;  %v5938_v47 = vld [vmem:[%s7093_s22 + $0x88] sm:$0xf] }
  0x56   : > { %v5682_v20 = vcombine.low %v712_v60, %v722_v17  ;;  %v741_v21 = vrot.slane %v740_v15, 4  ;;  %v3333_v22 = vsel %vm7215_vm7, %v3331_v11, %v3332_v3  ;;  %v7378_v24 = vsel %vm7215_vm7, %v5964_v5, %v3336_v13  ;;  %v5939_v56 = vld [vmem:[%s7093_s22 + $0x8c] sm:$0x1]  ;;  %v5942_v3 = vld [vmem:[%s7093_s22 + $0x98] sm:$0x1] }
  0x57   : > { %v736_v27 = vsel %vm7140_vm4, %v731_v18, %v735_v57  ;;  %v5980_v31 = vcombine.low %v3330_v10, %v3333_v22  ;;  %v3338_v32 = vrot.slane %v3336_v13, 4  ;;  %v750_v54 = vrot.slane %v748_v19, 4  ;;  %v5940_v57 = vld [vmem:[%s7093_s22 + $0x90] sm:$0xe]  ;;  %v618_v5 = vld [vmem:[%s7093_s22 + $0x48] sm:$0xf] }
  0x58   : > { %6443 = vmatprep.mubr.msk.bf16.mxu1 %vm322_vm1, %v5682_v20  ;;  %v746_v6 = vsel %vm7140_vm4, %v741_v21, %v745_v62  ;;  %v757_v33 = vshll.u32 %v613_v34, 16  ;;  %v761_v35 = vshrl.u32 %v613_v34, 16  ;;  %v767_v9 = vshll.u32 %v614_v25, 16  ;;  %v5941_v62 = vld [vmem:[%s7093_s22 + $0x94] sm:$0xf] }
  0x59   : > { %v5683_v38 = vcombine.low %v736_v27, %v746_v6  ;;  %v3340_v39 = vsel %vm7215_vm7, %v3338_v32, %v3339_v29  ;;  %v772_v40 = vshrl.u32 %v615_v26, 16  ;;  %v753_v44 = vrot.slane %v751_v7, 5  ;;  %v619_v19 = vld [vmem:[%s7093_s22 + $0x4c] sm:$0xf] }
  0x5a   : > { %v5981_v42 = vcombine.low %v7378_v24, %v3340_v39  ;;  %v759_v45 = vrot.slane %v757_v33, 5  ;;  %v763_v46 = vrot.slane %v761_v35, 4  ;;  %v769_v48 = vrot.slane %v767_v9, 5  ;;  %v620_v24 = vld [vmem:[%s7093_s22 + $0x50] sm:$0x1] }
  0x5b   : > { %6444 = vmatmul.mubr.msk.bf16.gmra.mrb[4].mxu1 %vm322_vm1, %v5683_v38  ;;  %v774_v49 = vrot.slane %v772_v40, 4  ;;  %v775_v50 = vshll.u32 %v615_v26, 16  ;;  %v781_v51 = vshll.u32 %v616_v36, 16  ;;  %v754_v52 = vor.u32 %v753_v44, %v750_v54  ;;  %v621_v54 = vld [vmem:[%s7093_s22 + $0x54] sm:$0xf] }
  0x5c   : > { %6588 = vmatmul.mubr.msk.bf16.gmra.mrb[12].mxu0 %vm322_vm1, %v5979_v28  ;;  %v764_v53 = vor.u32 %v763_v46, %v759_v45  ;;  %v785_v12 = vshrl.u32 %v616_v36, 16  ;;  %v791_v55 = vshll.u32 %v617_v23, 16  ;;  %v5965_v28 = vrot.slane %v5937_v41, 9  ;;  %v622_v36 = vld [vmem:[%s7093_s22 + $0x58] sm:$0xf] }
  0x5d   : > { %6591 = vmatprep.mubr.msk.bf16.mxu0 %vm322_vm1, %v5980_v31  ;;  %v777_v30 = vrot.slane %v775_v50, 5  ;;  %v783_v37 = vrot.slane %v781_v51, 5  ;;  %v3343_v14 = vrot.slane %v5938_v47, 5  ;;  %v755_v58 = vrot.slane %v754_v52, 4  ;;  %v623_v40 = vld [vmem:[%s7093_s22 + $0x5c] sm:$0x1] }
  0x5e   : > { %v765_v59 = vrot.slane %v764_v53, 4  ;;  %v787_v60 = vrot.slane %v785_v12, 4  ;;  %v793_v61 = vrot.slane %v791_v55, 5  ;;  %v3346_v8 = vrot.slane %v5939_v56, 5  ;;  %v5943_v41 = vld [vmem:[%s7093_s22 + $0x9c] sm:$0xe] }
  0x5f   : > { %v778_v63 = vor.u32 %v777_v30, %v774_v49  ;;  %v3344_v1 = vsel %vm7215_vm7, %v5965_v28, %v3343_v14  ;;  %v3345_v2 = vrot.slane %v3343_v14, 4  ;;  %v760_v15 = vsel %vm7140_vm4, %v755_v58, %v759_v45  ;;  %v5944_v47 = vld [vmem:[%s7093_s22 + $0xa0] sm:$0xf]  ;;  %v5945_v52 = vld [vmem:[%s7093_s22 + $0xa4] sm:$0x1] }
  0x60   : > { %v770_v10 = vsel %vm7140_vm4, %v765_v59, %v769_v48  ;;  %v788_v11 = vor.u32 %v787_v60, %v783_v37  ;;  %v5966_v13 = vrot.slane %v5940_v57, 9  ;;  %v3350_v34 = vrot.slane %v5941_v62, 5  ;;  %v5946_v30 = vld [vmem:[%s7093_s22 + $0xa8] sm:$0xe]  ;;  %v5947_v58 = vld [vmem:[%s7093_s22 + $0xac] sm:$0xf] }
  0x61   : > { %v5684_v17 = vcombine.low %v760_v15, %v770_v10  ;;  %v779_v18 = vrot.slane %v778_v63, 4  ;;  %v3347_v29 = vsel %vm7215_vm7, %v3345_v2, %v3346_v8  ;;  %v3353_v22 = vrot.slane %v5942_v3, 5  ;;  %v5948_v63 = vld [vmem:[%s7093_s22 + $0xb0] sm:$0x1]  ;;  %v625_v15 = vld [vmem:[%s7093_s22 + $0x64] sm:$0xf] }
  0x62   : > { %v789_v20 = vrot.slane %v788_v11, 4  ;;  %v5982_v21 = vcombine.low %v3344_v1, %v3347_v29  ;;  %v796_v25 = vshrl.u32 %v618_v5, 16  ;;  %v3351_v27 = vsel %vm7215_vm7, %v5966_v13, %v3350_v34 }
  0x63   : > { %6447 = vmatprep.mubr.msk.bf16.mxu1 %vm322_vm1, %v5684_v17  ;;  %v784_v26 = vsel %vm7140_vm4, %v779_v18, %v783_v37  ;;  %v3352_v31 = vrot.slane %v3350_v34, 4  ;;  %v799_v32 = vshll.u32 %v618_v5, 16  ;;  %v805_v33 = vshll.u32 %v619_v19, 16  ;;  %v624_v5 = vld [vmem:[%s7093_s22 + $0x60] sm:$0xf] }
  0x64   : > { %6592 = vmatmul.mubr.msk.bf16.gmra.mrb[16].mxu0 %vm322_vm1, %v5981_v42  ;;  %v794_v6 = vsel %vm7140_vm4, %v789_v20, %v793_v61  ;;  %v798_v7 = vrot.slane %v796_v25, 4  ;;  %v809_v35 = vshrl.u32 %v619_v19, 16  ;;  %v815_v23 = vshll.u32 %v620_v24, 16  ;;  %v626_v18 = vld [vmem:[%s7093_s22 + $0x68] sm:$0x1] }
  0x65   : > { %6595 = vmatprep.mubr.msk.bf16.mxu0 %vm322_vm1, %v5982_v21  ;;  %v5685_v38 = vcombine.low %v784_v26, %v794_v6  ;;  %v3354_v39 = vsel %vm7215_vm7, %v3352_v31, %v3353_v22  ;;  %v801_v9 = vrot.slane %v799_v32, 5  ;;  %v807_v44 = vrot.slane %v805_v33, 5  ;;  %v627_v21 = vld [vmem:[%s7093_s22 + $0x6c] sm:$0xf]  ;;  %v628_v6 = vld [vmem:[%s7093_s22 + $0x70] sm:$0xf] }
  0x66   : > { %v5983_v42 = vcombine.low %v3351_v27, %v3354_v39  ;;  %v811_v45 = vrot.slane %v809_v35, 4  ;;  %v820_v46 = vshrl.u32 %v621_v54, 16  ;;  %v817_v49 = vrot.slane %v815_v23, 5 }
  0x67   : > { %6448 = vmatmul.mubr.msk.bf16.gmra.mrb[8].mxu1 %vm322_vm1, %v5685_v38  ;;  %v802_v48 = vor.u32 %v801_v9, %v798_v7  ;;  %v823_v50 = vshll.u32 %v621_v54, 16  ;;  %v829_v51 = vshll.u32 %v622_v36, 16  ;;  %v833_v55 = vshrl.u32 %v622_v36, 16  ;;  %v629_v38 = vld [vmem:[%s7093_s22 + $0x74] sm:$0x1] }
  0x68   : > { %v812_v53 = vor.u32 %v811_v45, %v807_v44  ;;  %v822_v12 = vrot.slane %v820_v46, 4  ;;  %v839_v56 = vshll.u32 %v623_v40, 16  ;;  %v5967_v57 = vrot.slane %v5943_v41, 9  ;;  %v5949_v41 = vld [vmem:[%s7093_s22 + $0xb4] sm:$0xe] }
  0x69   : > { %v803_v37 = vrot.slane %v802_v48, 4  ;;  %v825_v28 = vrot.slane %v823_v50, 5  ;;  %v831_v14 = vrot.slane %v829_v51, 5  ;;  %v835_v60 = vrot.slane %v833_v55, 4  ;;  %v5951_v48 = vld [vmem:[%s7093_s22 + $0xbc] sm:$0x1] }
  0x6a   : > { %v813_v59 = vrot.slane %v812_v53, 4  ;;  %v841_v61 = vrot.slane %v839_v56, 5  ;;  %v3357_v62 = vrot.slane %v5944_v47, 5  ;;  %v3360_v8 = vrot.slane %v5945_v52, 5 }
  0x6b   : > { %v808_v1 = vsel %vm7140_vm4, %v803_v37, %v807_v44  ;;  %v826_v2 = vor.u32 %v825_v28, %v822_v12  ;;  %v5968_v3 = vrot.slane %v5946_v30, 9  ;;  %v836_v11 = vor.u32 %v835_v60, %v831_v14  ;;  %v5953_v12 = vld [vmem:[%s7093_s22 + $0xc4] sm:$0xf]  ;;  %v5954_v28 = vld [vmem:[%s7093_s22 + $0xc8] sm:$0x1] }
  0x6c   : > { %6596 = vmatmul.mubr.msk.bf16.gmra.mrb[20].mxu0 %vm322_vm1, %v5983_v42  ;;  %v818_v10 = vsel %vm7140_vm4, %v813_v59, %v817_v49  ;;  %v3358_v13 = vsel %vm7215_vm7, %v5967_v57, %v3357_v62  ;;  %v3359_v17 = vrot.slane %v3357_v62, 4  ;;  %v3364_v19 = vrot.slane %v5947_v58, 5  ;;  %v5950_v42 = vld [vmem:[%s7093_s22 + $0xb8] sm:$0xf]  ;;  %v5952_v49 = vld [vmem:[%s7093_s22 + $0xc0] sm:$0xe] }
  0x6d   : > { %v5686_v29 = vcombine.low %v808_v1, %v818_v10  ;;  %v827_v34 = vrot.slane %v826_v2, 4  ;;  %v3367_v20 = vrot.slane %v5948_v63, 5  ;;  %v837_v22 = vrot.slane %v836_v11, 4 }
  0x6e   : > { %v3361_v24 = vsel %vm7215_vm7, %v3359_v17, %v3360_v8  ;;  %v844_v25 = vshrl.u32 %v624_v5, 16  ;;  %v847_v26 = vshll.u32 %v624_v5, 16  ;;  %v3365_v32 = vsel %vm7215_vm7, %v5968_v3, %v3364_v19  ;;  %v631_v17 = vld [vmem:[%s7093_s22 + $0x7c] sm:$0xf] }
  0x6f   : > { %6451 = vmatprep.mubr.msk.bf16.mxu1 %vm322_vm1, %v5686_v29  ;;  %v832_v27 = vsel %vm7140_vm4, %v827_v34, %v831_v14  ;;  %v5984_v31 = vcombine.low %v3358_v13, %v3361_v24  ;;  %v3366_v54 = vrot.slane %v3364_v19, 4  ;;  %v842_v7 = vsel %vm7140_vm4, %v837_v22, %v841_v61  ;;  %v630_v14 = vld [vmem:[%s7093_s22 + $0x78] sm:$0xf]  ;;  %v632_v19 = vld [vmem:[%s7093_s22 + $0x80] sm:$0x1] }
  0x70   : > { %v846_v33 = vrot.slane %v844_v25, 4  ;;  %v849_v35 = vrot.slane %v847_v26, 5  ;;  %v853_v36 = vshll.u32 %v625_v15, 16  ;;  %v5687_v39 = vcombine.low %v832_v27, %v842_v7  ;;  %v633_v26 = vld [vmem:[%s7093_s22 + $0x84] sm:$0xf] }
  0x71   : > { %6599 = vmatprep.mubr.msk.bf16.mxu0 %vm322_vm1, %v5984_v31  ;;  %v3368_v9 = vsel %vm7215_vm7, %v3366_v54, %v3367_v20  ;;  %v857_v23 = vshrl.u32 %v625_v15, 16  ;;  %v863_v40 = vshll.u32 %v626_v18, 16  ;;  %v868_v47 = vshrl.u32 %v627_v21, 16  ;;  %v634_v27 = vld [vmem:[%s7093_s22 + $0x88] sm:$0xf] }
  0x72   : > { %v5985_v44 = vcombine.low %v3365_v32, %v3368_v9  ;;  %v850_v45 = vor.u32 %v849_v35, %v846_v33  ;;  %v855_v46 = vrot.slane %v853_v36, 5  ;;  %6452 = vmatmul.mubr.msk.bf16.gmra.mrb[12].mxu1 %vm322_vm1, %v5687_v39  ;;  %v871_v52 = vshll.u32 %v627_v21, 16 }
  0x73   : > { %v859_v50 = vrot.slane %v857_v23, 4  ;;  %v865_v51 = vrot.slane %v863_v40, 5  ;;  %v877_v53 = vshll.u32 %v628_v6, 16  ;;  %v870_v56 = vrot.slane %v868_v47, 4  ;;  %v635_v40 = vld [vmem:[%s7093_s22 + $0x8c] sm:$0x1] }
  0x74   : > { %6600 = vmatmul.mubr.msk.bf16.gmra.mrb[24].mxu0 %vm322_vm1, %v5985_v44  ;;  %v851_v55 = vrot.slane %v850_v45, 4  ;;  %v881_v30 = vshrl.u32 %v628_v6, 16  ;;  %v887_v37 = vshll.u32 %v629_v38, 16  ;;  %v873_v58 = vrot.slane %v871_v52, 5  ;;  %v7002_v38 = vld [vmem:[%s7093_s22 + $0x18] sm:$0xff]  }
  0x75   : > { %v860_v57 = vor.u32 %v859_v50, %v855_v46  ;;  %v879_v59 = vrot.slane %v877_v53, 5  ;;  %v5969_v60 = vrot.slane %v5949_v41, 9  ;;  %v3371_v1 = vrot.slane %v5950_v42, 5  ;;  %v636_v47 = vld [vmem:[%s7093_s22 + $0x90] sm:$0xf] }
  0x76   : > { %v856_v61 = vsel %vm7140_vm4, %v851_v55, %v855_v46  ;;  %v883_v62 = vrot.slane %v881_v30, 4  ;;  %v889_v63 = vrot.slane %v887_v37, 5  ;;  %v874_v8 = vor.u32 %v873_v58, %v870_v56  ;;  %v637_v56 = vld [vmem:[%s7093_s22 + $0x94] sm:$0xf]  ;;  %v639_v58 = vld [vmem:[%s7093_s22 + $0x9c] sm:$0xf] }
  0x77   : > { %v861_v2 = vrot.slane %v860_v57, 4  ;;  %v3374_v3 = vrot.slane %v5951_v48, 5  ;;  %v5970_v5 = vrot.slane %v5952_v49, 9  ;;  %v3372_v10 = vsel %vm7215_vm7, %v5969_v60, %v3371_v1 }
  0x78   : > { %v884_v15 = vor.u32 %v883_v62, %v879_v59  ;;  %v3373_v11 = vrot.slane %v3371_v1, 4  ;;  %v3378_v13 = vrot.slane %v5953_v12, 5  ;;  %v875_v29 = vrot.slane %v874_v8, 4 }
  0x79   : > { %v866_v18 = vsel %vm7140_vm4, %v861_v2, %v865_v51  ;;  %v3381_v34 = vrot.slane %v5954_v28, 5  ;;  %v892_v20 = vshrl.u32 %v630_v14, 16  ;;  %v895_v33 = vshll.u32 %v630_v14, 16  ;;  %v638_v28 = vld [vmem:[%s7093_s22 + $0x98] sm:$0x1] }
  0x7a   : > { %v5688_v21 = vcombine.low %v856_v61, %v866_v18  ;;  %v885_v22 = vrot.slane %v884_v15, 4  ;;  %v3375_v24 = vsel %vm7215_vm7, %v3373_v11, %v3374_v3  ;;  %v3379_v25 = vsel %vm7215_vm7, %v5970_v5, %v3378_v13  ;;  %v7003_v11 = vld [vmem:[%s7093_s22 + $0x24] sm:$0xff]  }
  0x7b   : > { %v880_v31 = vsel %vm7140_vm4, %v875_v29, %v879_v59  ;;  %v5986_v32 = vcombine.low %v3372_v10, %v3375_v24  ;;  %v3380_v54 = vrot.slane %v3378_v13, 4  ;;  %v894_v6 = vrot.slane %v892_v20, 4  ;;  %v641_v24 = vld [vmem:[%s7093_s22 + $0xa4] sm:$0x1] }
  0x7c   : > { %6455 = vmatprep.mubr.msk.bf16.mxu1 %vm322_vm1, %v5688_v21  ;;  %v890_v7 = vsel %vm7140_vm4, %v885_v22, %v889_v63  ;;  %v901_v35 = vshll.u32 %v631_v17, 16  ;;  %v905_v36 = vshrl.u32 %v631_v17, 16  ;;  %v911_v23 = vshll.u32 %v632_v19, 16  ;;  %v640_v63 = vld [vmem:[%s7093_s22 + $0xa0] sm:$0xf]  ;;  %v7004_v19 = vld [vmem:[%s7093_s22 + $0x30] sm:$0xff]  }
  0x7d   : > { %v5689_v39 = vcombine.low %v880_v31, %v890_v7  ;;  %6603 = vmatprep.mubr.msk.bf16.mxu0 %vm322_vm1, %v5986_v32  ;;  %v3382_v9 = vsel %vm7215_vm7, %v3380_v54, %v3381_v34  ;;  %v916_v41 = vshrl.u32 %v633_v26, 16  ;;  %v897_v44 = vrot.slane %v895_v33, 5  ;;  %v642_v54 = vld [vmem:[%s7093_s22 + $0xa8] sm:$0xf] }
  0x7e   : > { %v5987_v42 = vcombine.low %v3379_v25, %v3382_v9  ;;  %v903_v45 = vrot.slane %v901_v35, 5  ;;  %v907_v46 = vrot.slane %v905_v36, 4  ;;  %v913_v48 = vrot.slane %v911_v23, 5  ;;  %v643_v36 = vld [vmem:[%s7093_s22 + $0xac] sm:$0xf] }
  0x7f   : > { %6456 = vmatmul.mubr.msk.bf16.gmra.mrb[16].mxu1 %vm322_vm1, %v5689_v39  ;;  %v918_v49 = vrot.slane %v916_v41, 4  ;;  %v919_v50 = vshll.u32 %v633_v26, 16  ;;  %v925_v51 = vshll.u32 %v634_v27, 16  ;;  %v898_v52 = vor.u32 %v897_v44, %v894_v6  ;;  %v645_v41 = vld [vmem:[%s7093_s22 + $0xb4] sm:$0xf] }
  0x80   : > { %6604 = vmatmul.mubr.msk.bf16.gmra.mrb[28].mxu0 %vm322_vm1, %v5987_v42  ;;  %v908_v53 = vor.u32 %v907_v46, %v903_v45  ;;  %v929_v12 = vshrl.u32 %v634_v27, 16  ;;  %v935_v55 = vshll.u32 %v635_v40, 16  ;;  %v940_v14 = vshrl.u32 %v636_v47, 16  ;;  %v644_v40 = vld [vmem:[%s7093_s22 + $0xb0] sm:$0x1] }
  0x81   : > { %v921_v30 = vrot.slane %v919_v50, 5  ;;  %v927_v37 = vrot.slane %v925_v51, 5  ;;  %6609 = vmatprep.mubr.msk.bf16.mxu0 %vm322_vm1, %v7002_v38  ;;  %v943_v57 = vshll.u32 %v636_v47, 16  ;;  %v899_v59 = vrot.slane %v898_v52, 4  ;;  %v7526_v42 = vld [vmem:[%s8365_s1 + $0x6] sm:$0x3] }
  0x82   : > { %v909_v60 = vrot.slane %v908_v53, 4  ;;  %v931_v61 = vrot.slane %v929_v12, 4  ;;  %v937_v62 = vrot.slane %v935_v55, 5  ;;  %v942_v2 = vrot.slane %v940_v14, 4  ;;  %6970 = vmatprep.subr.msk.bf16.mxu1 %vm371_vm0, %v7526_v42  ;;  %v7005_v55 = vld [vmem:[%s7093_s22 + $0x3c] sm:$0xff]  }
  0x83   : > { %v922_v1 = vor.u32 %v921_v30, %v918_v49  ;;  %v945_v8 = vrot.slane %v943_v57, 5  ;;  %v949_v3 = vshll.u32 %v637_v56, 16  ;;  %v904_v5 = vsel %vm7140_vm4, %v899_v59, %v903_v45  ;;  %v647_v57 = vld [vmem:[%s7093_s22 + $0xbc] sm:$0x1] }
  0x84   : > { %v914_v15 = vsel %vm7140_vm4, %v909_v60, %v913_v48  ;;  %v932_v10 = vor.u32 %v931_v61, %v927_v37  ;;  %v953_v13 = vshrl.u32 %v637_v56, 16  ;;  %v959_v22 = vshll.u32 %v638_v28, 16 }
  0x85   : > { %v5690_v17 = vcombine.low %v904_v5, %v914_v15  ;;  %v923_v18 = vrot.slane %v922_v1, 4  ;;  %v946_v29 = vor.u32 %v945_v8, %v942_v2  ;;  %v951_v34 = vrot.slane %v949_v3, 5  ;;  %v1394_v5 = vld [vmem:[%s7093_s22 + $0x4] sm:$0xf]  ;;  %v1395_v15 = vld [vmem:[%s7093_s22 + $0x8] sm:$0x1] }
  0x86   : > { %v933_v20 = vrot.slane %v932_v10, 4  ;;  %v955_v21 = vrot.slane %v953_v13, 4  ;;  %v964_v25 = vshrl.u32 %v639_v58, 16  ;;  %v967_v31 = vshll.u32 %v639_v58, 16  ;;  %v7006_v58 = vld [vmem:[%s7093_s22 + $0x48] sm:$0xff]  }
  0x87   : > { %6459 = vmatprep.mubr.msk.bf16.mxu1 %vm322_vm1, %v5690_v17  ;;  %v928_v26 = vsel %vm7140_vm4, %v923_v18, %v927_v37  ;;  %v947_v27 = vrot.slane %v946_v29, 4  ;;  %v973_v32 = vshll.u32 %v640_v63, 16  ;;  %v961_v33 = vrot.slane %v959_v22, 5  ;;  %v1396_v18 = vld [vmem:[%s7093_s22 + $0xc] sm:$0xe] }
  0x88   : > { %v938_v6 = vsel %vm7140_vm4, %v933_v20, %v937_v62  ;;  %6610 = vmatmul.mubr.msk.bf16.vlgmr.msra.gmra.mrb[0].mxu0 %vm322_vm1, %v7003_v11  ;;  %v956_v7 = vor.u32 %v955_v21, %v951_v34  ;;  %v966_v35 = vrot.slane %v964_v25, 4  ;;  %v969_v9 = vrot.slane %v967_v31, 5  ;;  %v1397_v21 = vld [vmem:[%s7093_s22 + $0x10] sm:$0xf]  ;;  %v1398_v22 = vld [vmem:[%s7093_s22 + $0x14] sm:$0x1] }
  0x89   : > { %v5691_v38 = vcombine.low %v928_v26, %v938_v6  ;;  %6642 = vmatpush3.bf16.msra.mxu0 %v7126_v16  ;;  %v952_v39 = vsel %vm7140_vm4, %v947_v27, %v951_v34  ;;  %v975_v23 = vrot.slane %v973_v32, 5  ;;  %6613 = vmatprep.mubr.msk.bf16.mxu0 %vm322_vm1, %v7004_v19  ;;  %v977_v45 = vshrl.u32 %v640_v63, 16  ;;  %v646_v16 = vld [vmem:[%s7093_s22 + $0xb8] sm:$0xf]  ;;  %v1393_v63 = vld [vmem:[%s7093_s22] sm:$0xe] }
  0x8a   : > { %v957_v44 = vrot.slane %v956_v7, 4  ;;  %v983_v46 = vshll.u32 %v641_v24, 16  ;;  %v988_v47 = vshrl.u32 %v642_v54, 16  ;;  %v970_v48 = vor.u32 %v969_v9, %v966_v35  ;;  %v1399_v31 = vld [vmem:[%s7093_s22 + $0x18] sm:$0xe] }
  0x8b   : > { %6460 = vmatmul.mubr.msk.bf16.gmra.mrb[20].mxu1 %vm322_vm1, %v5691_v38  ;;  %v991_v49 = vshll.u32 %v642_v54, 16  ;;  %v997_v50 = vshll.u32 %v643_v36, 16  ;;  %v1001_v51 = vshrl.u32 %v643_v36, 16  ;;  %v979_v53 = vrot.slane %v977_v45, 4  ;;  %v1400_v32 = vld [vmem:[%s7093_s22 + $0x1c] sm:$0xf] }
  0x8c   : > { %v962_v52 = vsel %vm7140_vm4, %v957_v44, %v961_v33  ;;  %v985_v12 = vrot.slane %v983_v46, 5  ;;  %v990_v56 = vrot.slane %v988_v47, 4  ;;  %v971_v37 = vrot.slane %v970_v48, 4  ;;  %v7007_v35 = vld [vmem:[%s7093_s22 + $0x54] sm:$0xff]   ;;  %v1401_v36 = vld [vmem:[%s7093_s22 + $0x20] sm:$0x1] }
  0x8d   : > { %v5692_v30 = vcombine.low %v952_v39, %v962_v52  ;;  %v993_v28 = vrot.slane %v991_v49, 5  ;;  %v999_v14 = vrot.slane %v997_v50, 5  ;;  %v980_v59 = vor.u32 %v979_v53, %v975_v23  ;;  %v1402_v47 = vld [vmem:[%s7093_s22 + $0x24] sm:$0xe]  ;;  %v1404_v52 = vld [vmem:[%s7093_s22 + $0x2c] sm:$0x1] }
  0x8e   : > { %v1003_v60 = vrot.slane %v1001_v51, 4  ;;  %v1007_v61 = vshll.u32 %v644_v40, 16  ;;  %v1012_v62 = vshrl.u32 %v645_v41, 16  ;;  %v976_v1 = vsel %vm7140_vm4, %v971_v37, %v975_v23  ;;  %v7008_v40 = vld [vmem:[%s7093_s22 + $0x60] sm:$0xff]  }
  0x8f   : > { %6463 = vmatprep.mubr.msk.bf16.mxu1 %vm322_vm1, %v5692_v30  ;;  %v994_v2 = vor.u32 %v993_v28, %v990_v56  ;;  %v1015_v8 = vshll.u32 %v645_v41, 16  ;;  %v1021_v3 = vshll.u32 %v646_v16, 16  ;;  %v981_v10 = vrot.slane %v980_v59, 4  ;;  %v1405_v30 = vld [vmem:[%s7093_s22 + $0x30] sm:$0xe] }
  0x90   : > { %6614 = vmatmul.mubr.msk.bf16.gmra.mrb[4].mxu0 %vm322_vm1, %v7005_v55  ;;  %v1004_v11 = vor.u32 %v1003_v60, %v999_v14  ;;  %v1009_v13 = vrot.slane %v1007_v61, 5  ;;  %v1014_v17 = vrot.slane %v1012_v62, 4  ;;  %v1025_v20 = vshrl.u32 %v646_v16, 16  ;;  %v1403_v16 = vld [vmem:[%s7093_s22 + $0x28] sm:$0xf] }
  0x91   : > { %v995_v29 = vrot.slane %v994_v2, 4  ;;  %v1017_v34 = vrot.slane %v1015_v8, 5  ;;  %v1023_v19 = vrot.slane %v1021_v3, 5  ;;  %6617 = vmatprep.mubr.msk.bf16.mxu0 %vm322_vm1, %v7006_v58  ;;  %v986_v24 = vsel %vm7140_vm4, %v981_v10, %v985_v12  ;;  %v1406_v58 = vld [vmem:[%s7093_s22 + $0x34] sm:$0xf]  ;;  %v7009_v10 = vld [vmem:[%s7093_s22 + $0x6c] sm:$0xff]  }
  0x92   : > { %v1005_v25 = vrot.slane %v1004_v11, 4  ;;  %v1031_v26 = vshll.u32 %v647_v57, 16  ;;  %v5712_v27 = vrot.slane %v1393_v63, 9  ;;  %v5693_v54 = vcombine.low %v976_v1, %v986_v24  ;;  %v1407_v59 = vld [vmem:[%s7093_s22 + $0x38] sm:$0x1] }
  0x93   : > { %v1000_v6 = vsel %vm7140_vm4, %v995_v29, %v999_v14  ;;  %v1018_v7 = vor.u32 %v1017_v34, %v1014_v17  ;;  %v1027_v33 = vrot.slane %v1025_v20, 4  ;;  %v1494_v9 = vrot.slane %v1394_v5, 5  ;;  %v1408_v60 = vld [vmem:[%s7093_s22 + $0x3c] sm:$0xe]  ;;  %v1409_v61 = vld [vmem:[%s7093_s22 + $0x40] sm:$0xf] }
  0x94   : > { %v1010_v38 = vsel %vm7140_vm4, %v1005_v25, %v1009_v13  ;;  %v1033_v39 = vrot.slane %v1031_v26, 5  ;;  %v1497_v23 = vrot.slane %v1395_v15, 5  ;;  %6464 = vmatmul.mubr.msk.bf16.gmra.mrb[24].mxu1 %vm322_vm1, %v5693_v54  ;;  %v5713_v46 = vrot.slane %v1396_v18, 9  ;;  %v1410_v8 = vld [vmem:[%s7093_s22 + $0x44] sm:$0x1]  ;;  %v7010_v34 = vld [vmem:[%s7093_s22 + $0x78] sm:$0xff]  }
  0x95   : > { %v5694_v41 = vcombine.low %v1000_v6, %v1010_v38  ;;  %v1019_v44 = vrot.slane %v1018_v7, 4  ;;  %v1028_v45 = vor.u32 %v1027_v33, %v1023_v19  ;;  %v1495_v48 = vsel %vm7215_vm7, %v5712_v27, %v1494_v9  ;;  %v1411_v3 = vld [vmem:[%s7093_s22 + $0x48] sm:$0xe]  ;;  %v1412_v20 = vld [vmem:[%s7093_s22 + $0x4c] sm:$0xf] }
  0x96   : > { %v1496_v49 = vrot.slane %v1494_v9, 4  ;;  %v1501_v50 = vrot.slane %v1397_v21, 5  ;;  %v1504_v51 = vrot.slane %v1398_v22, 5  ;;  %v5714_v55 = vrot.slane %v1399_v31, 9  ;;  %v1413_v21 = vld [vmem:[%s7093_s22 + $0x50] sm:$0x1] }
  0x97   : > { %6467 = vmatprep.mubr.msk.bf16.mxu1 %vm322_vm1, %v5694_v41  ;;  %v1024_v53 = vsel %vm7140_vm4, %v1019_v44, %v1023_v19  ;;  %v1029_v12 = vrot.slane %v1028_v45, 4  ;;  %v1508_v56 = vrot.slane %v1400_v32, 5  ;;  %v1511_v57 = vrot.slane %v1401_v36, 5  ;;  %v1414_v27 = vld [vmem:[%s7093_s22 + $0x54] sm:$0xe] }
  0x98   : > { %6618 = vmatmul.mubr.msk.bf16.gmra.mrb[8].mxu0 %vm322_vm1, %v7007_v35  ;;  %v1498_v37 = vsel %vm7215_vm7, %v1496_v49, %v1497_v23  ;;  %v7574_v28 = vsel %vm7215_vm7, %v5713_v46, %v1501_v50  ;;  %v1503_v14 = vrot.slane %v1501_v50, 4  ;;  %v5715_v11 = vrot.slane %v1402_v47, 9  ;;  %v1415_v31 = vld [vmem:[%s7093_s22 + $0x58] sm:$0xf]  ;;  %v1416_v7 = vld [vmem:[%s7093_s22 + $0x5c] sm:$0x1] }
  0x99   : > { %v1034_v62 = vsel %vm7140_vm4, %v1029_v12, %v1033_v39  ;;  %v5729_v63 = vcombine.low %v1495_v48, %v1498_v37  ;;  %6621 = vmatprep.mubr.msk.bf16.mxu0 %vm322_vm1, %v7008_v40  ;;  %v7585_v1 = vsel %vm7215_vm7, %v5714_v55, %v1508_v56  ;;  %v1510_v2 = vrot.slane %v1508_v56, 4  ;;  %v1417_v39 = vld [vmem:[%s7093_s22 + $0x60] sm:$0xe]  ;;  %v1418_v44 = vld [vmem:[%s7093_s22 + $0x64] sm:$0xf] }
  0x9a   : > { %v5695_v5 = vcombine.low %v1024_v53, %v1034_v62  ;;  %v7591_v15 = vsel %vm7215_vm7, %v1503_v14, %v1504_v51  ;;  %v1515_v13 = vrot.slane %v1403_v16, 5  ;;  %v1518_v29 = vrot.slane %v1404_v52, 5  ;;  %v1419_v45 = vld [vmem:[%s7093_s22 + $0x68] sm:$0x1]  ;;  %v1420_v46 = vld [vmem:[%s7093_s22 + $0x6c] sm:$0xe] }
  0x9b   : > { %v5730_v17 = vcombine.low %v7574_v28, %v7591_v15  ;;  %v7598_v18 = vsel %vm7215_vm7, %v1510_v2, %v1511_v57  ;;  %v7603_v19 = vsel %vm371_vm0, %v7526_v42, 0  ;;  %v5716_v26 = vrot.slane %v1405_v30, 9  ;;  %v1421_v47 = vld [vmem:[%s7093_s22 + $0x70] sm:$0xf]  ;;  %v1422_v51 = vld [vmem:[%s7093_s22 + $0x74] sm:$0x1] }
  0x9c   : > { %v5731_v22 = vcombine.low %v7585_v1, %v7598_v18  ;;  %v7611_v24 = vsel %vm7215_vm7, %v5715_v11, %v1515_v13  ;;  %v1517_v25 = vrot.slane %v1515_v13, 4  ;;  %6468 = vmatmul.mubr.msk.bf16.gmra.mrb[28].mxu1 %vm322_vm1, %v5695_v5  ;;  %v1522_v32 = vrot.slane %v1406_v58, 5  ;;  %v1423_v14 = vld [vmem:[%s7093_s22 + $0x78] sm:$0xe]  ;;  %v1424_v57 = vld [vmem:[%s7093_s22 + $0x7c] sm:$0xf] }
  0x9d   : > { %v1525_v42 = vrot.slane %v1407_v59, 5  ;;  %v5717_v54 = vrot.slane %v1408_v60, 9  ;;  %v1529_v6 = vrot.slane %v1409_v61, 5  ;;  %6473 = vmatprep.mubr.msk.bf16.mxu1 %vm322_vm1, %v5729_v63  ;;  %v1532_v35 = vrot.slane %v1410_v8, 5  ;;  %v7011_v58 = vld [vmem:[%s7093_s22 + $0x84] sm:$0xff]  }
  0x9e   : > { %v7620_v33 = vsel %vm7215_vm7, %v1517_v25, %v1518_v29  ;;  %v5718_v36 = vrot.slane %v1411_v3, 9  ;;  %v1536_v38 = vrot.slane %v1412_v20, 5  ;;  %v7627_v23 = vsel %vm7215_vm7, %v5716_v26, %v1522_v32  ;;  %v1425_v63 = vld [vmem:[%s7093_s22 + $0x80] sm:$0x1]  ;;  %v1426_v1 = vld [vmem:[%s7093_s22 + $0x84] sm:$0xe] }
  0x9f   : > { %v5732_v9 = vcombine.low %v7611_v24, %v7620_v33  ;;  %v1524_v40 = vrot.slane %v1522_v32, 4  ;;  %v7631_v41 = vsel %vm7215_vm7, %v5717_v54, %v1529_v6  ;;  %v1531_v16 = vrot.slane %v1529_v6, 4  ;;  %v1427_v15 = vld [vmem:[%s7093_s22 + $0x88] sm:$0xf]  ;;  %v6069_v26 = vld [vmem:[%s7093_s22 + $0x18] sm:$0xf] }
  0xa0   : > { %6622 = vmatmul.mubr.msk.bf16.gmra.mrb[12].mxu0 %vm322_vm1, %v7009_v10  ;;  %v7640_v48 = vsel %vm7215_vm7, %v5718_v36, %v1536_v38  ;;  %v1538_v49 = vrot.slane %v1536_v38, 4  ;;  %v1539_v50 = vrot.slane %v1413_v21, 5  ;;  %v5719_v53 = vrot.slane %v1414_v27, 9  ;;  %v7012_v10 = vld [vmem:[%s7093_s22 + $0x90] sm:$0xff]   ;;  %v6070_v32 = vld [vmem:[%s7093_s22 + $0x1c] sm:$0xf] }
  0xa1   : > { %6625 = vmatprep.mubr.msk.bf16.mxu0 %vm322_vm1, %v7010_v34  ;;  %v7646_v52 = vsel %vm7215_vm7, %v1524_v40, %v1525_v42  ;;  %v1543_v12 = vrot.slane %v1415_v31, 5  ;;  %v1546_v55 = vrot.slane %v1416_v7, 5  ;;  %v7652_v30 = vsel %vm7215_vm7, %v1531_v16, %v1532_v35  ;;  %v1428_v34 = vld [vmem:[%s7093_s22 + $0x8c] sm:$0x1]  ;;  %v7034_v42 = vld [vmem:[%s8365_s1 + $0x8] sm:$0x3] }
  0xa2   : > { %v5733_v56 = vcombine.low %v7627_v23, %v7646_v52  ;;  %v7656_v37 = vsel %vm7215_vm7, %v1538_v49, %v1539_v50  ;;  %v5720_v28 = vrot.slane %v1417_v39, 9  ;;  %v5734_v59 = vcombine.low %v7631_v41, %v7652_v30  ;;  %v6214_v36 = vld [vmem:[%s8365_s1 + $0x10] sm:$0x3] }
  0xa3   : > { %v5735_v60 = vcombine.low %v7640_v48, %v7656_v37  ;;  %v7667_v61 = vsel %vm7215_vm7, %v5719_v53, %v1543_v12  ;;  %v1545_v62 = vrot.slane %v1543_v12, 4  ;;  %v1550_v2 = vrot.slane %v1418_v44, 5  ;;  %v6071_v44 = vld [vmem:[%s7093_s22 + $0x20] sm:$0x1]  ;;  %6976 = vmatprep.subr.msk.bf16.mxu0 %vm371_vm0, %v6214_v36 }
  0xa4   : > { %v1553_v8 = vrot.slane %v1419_v45, 5  ;;  %v5721_v3 = vrot.slane %v1420_v46, 9  ;;  %v1557_v5 = vrot.slane %v1421_v47, 5  ;;  %6474 = vmatmul.mubr.msk.bf16.vlgmr.msra.gmra.mrb[0].mxu1 %vm322_vm1, %v5730_v17  ;;  %v1560_v13 = vrot.slane %v1422_v51, 5  ;;  %v6072_v46 = vld [vmem:[%s7093_s22 + $0x24] sm:$0xf] }
  0xa5   : > { %v7676_v11 = vsel %vm7215_vm7, %v1545_v62, %v1546_v55  ;;  %v5722_v18 = vrot.slane %v1423_v14, 9  ;;  %v1564_v29 = vrot.slane %v1424_v57, 5  ;;  %6477 = vmatprep.mubr.msk.bf16.mxu1 %vm322_vm1, %v5731_v22  ;;  %6506 = vmatpush3.bf16.msra.mxu1 %v7603_v19  ;;  %v7685_v17 = vsel %vm7215_vm7, %v5720_v28, %v1550_v2  ;;  %v6073_v28 = vld [vmem:[%s7093_s22 + $0x28] sm:$0xf]  ;;  %v7013_v14 = vld [vmem:[%s7093_s22 + $0x9c] sm:$0xff]  }
  0xa6   : > { %v5736_v20 = vcombine.low %v7667_v61, %v7676_v11  ;;  %v1552_v21 = vrot.slane %v1550_v2, 4  ;;  %v7689_v25 = vsel %vm7215_vm7, %v5721_v3, %v1557_v5  ;;  %v1559_v27 = vrot.slane %v1557_v5, 4  ;;  %6972 = vmatprep.subr.msk.bf16.mxu1 %vm371_vm0, %v7034_v42  ;;  %v6074_v62 = vld [vmem:[%s7093_s22 + $0x2c] sm:$0x1] }
  0xa7   : > { %v7694_v31 = vsel %vm7215_vm7, %v5722_v18, %v1564_v29  ;;  %v1566_v19 = vrot.slane %v1564_v29, 4  ;;  %v1567_v22 = vrot.slane %v1425_v63, 5  ;;  %v5723_v6 = vrot.slane %v1426_v1, 9  ;;  %v7014_v2 = vld [vmem:[%s7093_s22 + $0xa8] sm:$0xff]   ;;  %v1430_v18 = vld [vmem:[%s7093_s22 + $0x94] sm:$0xf] }
  0xa8   : > { %6626 = vmatmul.mubr.msk.bf16.gmra.mrb[16].mxu0 %vm322_vm1, %v7011_v58  ;;  %v7704_v54 = vsel %vm7215_vm7, %v1552_v21, %v1553_v8  ;;  %v1571_v7 = vrot.slane %v1427_v15, 5  ;;  %v1574_v35 = vrot.slane %v1428_v34, 5  ;;  %v7714_v39 = vsel %vm7215_vm7, %v1559_v27, %v1560_v13  ;;  %v1431_v27 = vld [vmem:[%s7093_s22 + $0x98] sm:$0x1] }
  0xa9   : > { %6629 = vmatprep.mubr.msk.bf16.mxu0 %vm322_vm1, %v7012_v10  ;;  %v5737_v38 = vcombine.low %v7685_v17, %v7704_v54  ;;  %v7718_v40 = vsel %vm7215_vm7, %v1566_v19, %v1567_v22  ;;  %v4213_v45 = vshrl.u32 %v6069_v26, 16  ;;  %v5738_v47 = vcombine.low %v7689_v25, %v7714_v39  ;;  %v1429_v10 = vld [vmem:[%s7093_s22 + $0x90] sm:$0xe]  ;;  %v1432_v19 = vld [vmem:[%s7093_s22 + $0x9c] sm:$0xe] }
  0xaa   : > { %v5739_v16 = vcombine.low %v7694_v31, %v7718_v40  ;;  %v7729_v49 = vsel %vm7215_vm7, %v5723_v6, %v1571_v7  ;;  %v1573_v50 = vrot.slane %v1571_v7, 4  ;;  %v4216_v53 = vshll.u32 %v6069_v26, 16  ;;  %v6082_v17 = vld [vmem:[%s7093_s22 + $0x4c] sm:$0xf]  ;;  %v6088_v39 = vld [vmem:[%s7093_s22 + $0x64] sm:$0xf] }
  0xab   : > { %v4215_v51 = vrot.slane %v4213_v45, 4  ;;  %v4222_v12 = vshll.u32 %v6070_v32, 16  ;;  %v4226_v55 = vshrl.u32 %v6070_v32, 16  ;;  %v4232_v58 = vshll.u32 %v6071_v44, 16 }
  0xac   : > { %v7735_v57 = vsel %vm7215_vm7, %v1573_v50, %v1574_v35  ;;  %v4237_v63 = vshrl.u32 %v6072_v46, 16  ;;  %v4240_v1 = vshll.u32 %v6072_v46, 16  ;;  %6478 = vmatmul.mubr.msk.bf16.gmra.mrb[4].mxu1 %vm322_vm1, %v5732_v9  ;;  %v4218_v3 = vrot.slane %v4216_v53, 5  ;;  %v1434_v50 = vld [vmem:[%s7093_s22 + $0xa4] sm:$0x1] }
  0xad   : > { %v5740_v8 = vcombine.low %v7729_v49, %v7735_v57  ;;  %v4224_v5 = vrot.slane %v4222_v12, 5  ;;  %v4228_v15 = vrot.slane %v4226_v55, 4  ;;  %6481 = vmatprep.mubr.msk.bf16.mxu1 %vm322_vm1, %v5733_v56  ;;  %v4234_v13 = vrot.slane %v4232_v58, 5  ;;  %v1433_v56 = vld [vmem:[%s7093_s22 + $0xa0] sm:$0xf]  ;;  %v7015_v58 = vld [vmem:[%s7093_s22 + $0xb4] sm:$0xff]  }
  0xae   : > { %v4239_v24 = vrot.slane %v4237_v63, 4  ;;  %v4242_v33 = vrot.slane %v4240_v1, 5  ;;  %v4246_v9 = vshll.u32 %v6073_v28, 16  ;;  %v4219_v29 = vor.u32 %v4218_v3, %v4215_v51  ;;  %v7016_v3 = vld [vmem:[%s7093_s22 + $0xc0] sm:$0xff]  }
  0xaf   : > { %v4229_v34 = vor.u32 %v4228_v15, %v4224_v5  ;;  %v4250_v21 = vshrl.u32 %v6073_v28, 16  ;;  %v4256_v26 = vshll.u32 %v6074_v62, 16  ;;  %v7755_v23 = vsel %vm371_vm0, %v6214_v36, 0  ;;  %v6075_v28 = vld [vmem:[%s7093_s22 + $0x30] sm:$0xf] }
  0xb0   : > { %6630 = vmatmul.mubr.msk.bf16.gmra.mrb[20].mxu0 %vm322_vm1, %v7013_v14  ;;  %v4243_v22 = vor.u32 %v4242_v33, %v4239_v24  ;;  %v4248_v32 = vrot.slane %v4246_v9, 5  ;;  %v5724_v52 = vrot.slane %v1429_v10, 9  ;;  %v4220_v42 = vrot.slane %v4219_v29, 4  ;;  %v6076_v14 = vld [vmem:[%s7093_s22 + $0x34] sm:$0xf] }
  0xb1   : > { %6633 = vmatprep.mubr.msk.bf16.mxu0 %vm322_vm1, %v7014_v2  ;;  %v4230_v6 = vrot.slane %v4229_v34, 4  ;;  %v4252_v7 = vrot.slane %v4250_v21, 4  ;;  %v4258_v35 = vrot.slane %v4256_v26, 5  ;;  %v1578_v45 = vrot.slane %v1430_v18, 5  ;;  %v6077_v24 = vld [vmem:[%s7093_s22 + $0x38] sm:$0x1] }
  0xb2   : > { %v4244_v44 = vrot.slane %v4243_v22, 4  ;;  %v1581_v46 = vrot.slane %v1431_v27, 5  ;;  %v5725_v51 = vrot.slane %v1432_v19, 9  ;;  %v4225_v36 = vsel %vm7140_vm4, %v4220_v42, %v4224_v5  ;;  %v6078_v9 = vld [vmem:[%s7093_s22 + $0x3c] sm:$0xf] }
  0xb3   : > { %v4235_v53 = vsel %vm7140_vm4, %v4230_v6, %v4234_v13  ;;  %v4253_v12 = vor.u32 %v4252_v7, %v4248_v32  ;;  %v1585_v55 = vrot.slane %v1433_v56, 5  ;;  %v7773_v1 = vsel %vm7215_vm7, %v5724_v52, %v1578_v45  ;;  %v6080_v34 = vld [vmem:[%s7093_s22 + $0x44] sm:$0x1]  ;;  %v1435_v22 = vld [vmem:[%s7093_s22 + $0xa8] sm:$0xe] }
  0xb4   : > { %v7767_v62 = vcombine.low %v4225_v36, %v4235_v53  ;;  %v4249_v63 = vsel %vm7140_vm4, %v4244_v44, %v4248_v32  ;;  %v1580_v2 = vrot.slane %v1578_v45, 4  ;;  %6482 = vmatmul.mubr.msk.bf16.gmra.mrb[8].mxu1 %vm322_vm1, %v5734_v59  ;;  %v1588_v13 = vrot.slane %v1434_v50, 5  ;;  %v1436_v32 = vld [vmem:[%s7093_s22 + $0xac] sm:$0xf]  ;;  %v1437_v7 = vld [vmem:[%s7093_s22 + $0xb0] sm:$0x1] }
  0xb5   : > { %v4254_v5 = vrot.slane %v4253_v12, 4  ;;  %v7782_v15 = vsel %vm7215_vm7, %v5725_v51, %v1585_v55  ;;  %v1587_v10 = vrot.slane %v1585_v55, 4  ;;  %6485 = vmatprep.mubr.msk.bf16.mxu1 %vm322_vm1, %v5735_v60  ;;  %v4261_v30 = vshrl.u32 %v6075_v28, 16  ;;  %v6079_v60 = vld [vmem:[%s7093_s22 + $0x40] sm:$0xf]  ;;  %v7017_v51 = vld [vmem:[%s7093_s22 + $0xcc] sm:$0xff]  }
  0xb6   : > { %v7791_v41 = vsel %vm7215_vm7, %v1580_v2, %v1581_v46  ;;  %v4264_v59 = vshll.u32 %v6075_v28, 16  ;;  %v4270_v33 = vshll.u32 %v6076_v14, 16  ;;  %v4274_v37 = vshrl.u32 %v6076_v14, 16  ;;  %v1438_v50 = vld [vmem:[%s7093_s22 + $0xb4] sm:$0xe] }
  0xb7   : > { %v4259_v18 = vsel %vm7140_vm4, %v4254_v5, %v4258_v35  ;;  %v5741_v29 = vcombine.low %v7773_v1, %v7791_v41  ;;  %v7800_v48 = vsel %vm7215_vm7, %v1587_v10, %v1588_v13  ;;  %v4263_v27 = vrot.slane %v4261_v30, 4  ;;  %v1439_v28 = vld [vmem:[%s7093_s22 + $0xb8] sm:$0xf]  ;;  %v6081_v5 = vld [vmem:[%s7093_s22 + $0x48] sm:$0xf] }
  0xb8   : > { %6634 = vmatmul.mubr.msk.bf16.gmra.mrb[24].mxu0 %vm322_vm1, %v7015_v58  ;;  %v7805_v21 = vcombine.low %v4249_v63, %v4259_v18  ;;  %v5742_v26 = vcombine.low %v7782_v15, %v7800_v48  ;;  %v4266_v19 = vrot.slane %v4264_v59, 5  ;;  %v4272_v52 = vrot.slane %v4270_v33, 5 }
  0xb9   : > { %6637 = vmatprep.mubr.msk.bf16.mxu0 %vm322_vm1, %v7016_v3  ;;  %v4276_v56 = vrot.slane %v4274_v37, 4  ;;  %v4280_v42 = vshll.u32 %v6077_v24, 16  ;;  %v4285_v6 = vshrl.u32 %v6078_v9, 16  ;;  %v4288_v44 = vshll.u32 %v6078_v9, 16  ;;  %v1440_v3 = vld [vmem:[%s7093_s22 + $0xbc] sm:$0x1] }
  0xba   : > { %v4267_v35 = vor.u32 %v4266_v19, %v4263_v27  ;;  %v4294_v45 = vshll.u32 %v6079_v60, 16  ;;  %v4298_v46 = vshrl.u32 %v6079_v60, 16  ;;  %v4304_v55 = vshll.u32 %v6080_v34, 16  ;;  %v6083_v27 = vld [vmem:[%s7093_s22 + $0x50] sm:$0x1] }
  0xbb   : > { %v4277_v36 = vor.u32 %v4276_v56, %v4272_v52  ;;  %v4282_v53 = vrot.slane %v4280_v42, 5  ;;  %v4287_v12 = vrot.slane %v4285_v6, 4  ;;  %v4290_v58 = vrot.slane %v4288_v44, 5  ;;  %v6084_v56 = vld [vmem:[%s7093_s22 + $0x54] sm:$0xf] }
  0xbc   : > { %v4268_v14 = vrot.slane %v4267_v35, 4  ;;  %v4296_v63 = vrot.slane %v4294_v45, 5  ;;  %v4300_v2 = vrot.slane %v4298_v46, 4  ;;  %6486 = vmatmul.mubr.msk.bf16.gmra.mrb[12].mxu1 %vm322_vm1, %v5736_v20  ;;  %v4306_v13 = vrot.slane %v4304_v55, 5  ;;  %v6085_v35 = vld [vmem:[%s7093_s22 + $0x58] sm:$0xf] }
  0xbd   : > { %v4278_v10 = vrot.slane %v4277_v36, 4  ;;  %v5726_v24 = vrot.slane %v1435_v22, 9  ;;  %v1592_v30 = vrot.slane %v1436_v32, 5  ;;  %6489 = vmatprep.mubr.msk.bf16.mxu1 %vm322_vm1, %v5737_v38  ;;  %v4291_v33 = vor.u32 %v4290_v58, %v4287_v12  ;;  %v6087_v36 = vld [vmem:[%s7093_s22 + $0x60] sm:$0xf] }
  0xbe   : > { %v4273_v59 = vsel %vm7140_vm4, %v4268_v14, %v4272_v52  ;;  %v4301_v9 = vor.u32 %v4300_v2, %v4296_v63  ;;  %v1595_v18 = vrot.slane %v1437_v7, 5  ;;  %v5727_v37 = vrot.slane %v1438_v50, 9 }
  0xbf   : > { %v4283_v61 = vsel %vm7140_vm4, %v4278_v10, %v4282_v53  ;;  %v7832_v11 = vsel %vm7215_vm7, %v5726_v24, %v1592_v30  ;;  %v1594_v20 = vrot.slane %v1592_v30, 4  ;;  %v4292_v38 = vrot.slane %v4291_v33, 4 }
  0xc0   : > { %6638 = vmatmul.mubr.msk.bf16.gmra.mrb[28].mxu0 %vm322_vm1, %v7017_v51  ;;  %v6120_v54 = vcombine.low %v4273_v59, %v4283_v61  ;;  %v4302_v60 = vrot.slane %v4301_v9, 4  ;;  %v1599_v34 = vrot.slane %v1439_v28, 5  ;;  %v1602_v22 = vrot.slane %v1440_v3, 5  ;;  %v6086_v51 = vld [vmem:[%s7093_s22 + $0x5c] sm:$0x1] }
  0xc1   : > { %6643 = vmatprep.mubr.msk.bf16.mxu0 %vm322_vm1, %v7767_v62  ;;  %v7841_v19 = vsel %vm7215_vm7, %v1594_v20, %v1595_v18  ;;  %v4309_v32 = vshrl.u32 %v6081_v5, 16  ;;  %v4312_v52 = vshll.u32 %v6081_v5, 16  ;;  %v4297_v42 = vsel %vm7140_vm4, %v4292_v38, %v4296_v63  ;;  %v6089_v18 = vld [vmem:[%s7093_s22 + $0x68] sm:$0x1] }
  0xc2   : > { %v4307_v6 = vsel %vm7140_vm4, %v4302_v60, %v4306_v13  ;;  %v5743_v7 = vcombine.low %v7832_v11, %v7841_v19  ;;  %v7852_v62 = vsel %vm7215_vm7, %v5727_v37, %v1599_v34  ;;  %v1601_v45 = vrot.slane %v1599_v34, 4  ;;  %v6090_v37 = vld [vmem:[%s7093_s22 + $0x6c] sm:$0xf]  ;;  %v6091_v34 = vld [vmem:[%s7093_s22 + $0x70] sm:$0xf] }
  0xc3   : > { %v7855_v44 = vcombine.low %v4297_v42, %v4307_v6  ;;  %v4311_v46 = vrot.slane %v4309_v32, 4  ;;  %v4314_v50 = vrot.slane %v4312_v52, 5  ;;  %v4318_v53 = vshll.u32 %v6082_v17, 16 }
  0xc4   : > { %v4322_v12 = vshrl.u32 %v6082_v17, 16  ;;  %v4328_v55 = vshll.u32 %v6083_v27, 16  ;;  %v4333_v28 = vshrl.u32 %v6084_v56, 16  ;;  %6490 = vmatmul.mubr.msk.bf16.gmra.mrb[16].mxu1 %vm322_vm1, %v5738_v47  ;;  %v7865_v14 = vsel %vm7215_vm7, %v1601_v45, %v1602_v22 }
  0xc5   : > { %v4315_v58 = vor.u32 %v4314_v50, %v4311_v46  ;;  %v4336_v63 = vshll.u32 %v6084_v56, 16  ;;  %v4342_v2 = vshll.u32 %v6085_v35, 16  ;;  %6493 = vmatprep.mubr.msk.bf16.mxu1 %vm322_vm1, %v5739_v16  ;;  %v5744_v3 = vcombine.low %v7852_v62, %v7865_v14 }
  0xc6   : > { %v4320_v5 = vrot.slane %v4318_v53, 5  ;;  %v4324_v10 = vrot.slane %v4322_v12, 4  ;;  %v4330_v25 = vrot.slane %v4328_v55, 5  ;;  %v4335_v13 = vrot.slane %v4333_v28, 4 }
  0xc7   : > { %v4316_v47 = vrot.slane %v4315_v58, 4  ;;  %v4338_v24 = vrot.slane %v4336_v63, 5  ;;  %v4344_v30 = vrot.slane %v4342_v2, 5  ;;  %v4346_v31 = vshrl.u32 %v6085_v35, 16 }
  0xc8   : > { %6644 = vmatmul.mubr.msk.bf16.vlgmr.msra.gmra.mrb[0].mxu0 %vm322_vm1, %v7805_v21  ;;  %v4325_v59 = vor.u32 %v4324_v10, %v4320_v5  ;;  %v4352_v40 = vshll.u32 %v6086_v51, 16  ;;  %v4357_v16 = vshrl.u32 %v6087_v36, 16  ;;  %v4360_v61 = vshll.u32 %v6087_v36, 16  ;;  %v6093_v51 = vld [vmem:[%s7093_s22 + $0x78] sm:$0xf] }
  0xc9   : > { %6676 = vmatpush3.bf16.msra.mxu0 %v7755_v23  ;;  %6647 = vmatprep.mubr.msk.bf16.mxu0 %vm322_vm1, %v6120_v54  ;;  %v4321_v33 = vsel %vm7140_vm4, %v4316_v47, %v4320_v5  ;;  %v4339_v9 = vor.u32 %v4338_v24, %v4335_v13  ;;  %v4366_v20 = vshll.u32 %v6088_v39, 16  ;;  %v4348_v21 = vrot.slane %v4346_v31, 4  ;;  %v6092_v54 = vld [vmem:[%s7093_s22 + $0x74] sm:$0x1]  ;;  %v6096_v47 = vld [vmem:[%s7093_s22 + $0x84] sm:$0xf] }
  0xca   : > { %v4326_v17 = vrot.slane %v4325_v59, 4  ;;  %v4354_v38 = vrot.slane %v4352_v40, 5  ;;  %v4359_v60 = vrot.slane %v4357_v16, 4  ;;  %v4362_v22 = vrot.slane %v4360_v61, 5  ;;  %v6097_v59 = vld [vmem:[%s7093_s22 + $0x88] sm:$0xf] }
  0xcb   : > { %v4340_v27 = vrot.slane %v4339_v9, 4  ;;  %v4368_v23 = vrot.slane %v4366_v20, 5  ;;  %v4370_v32 = vshrl.u32 %v6088_v39, 16  ;;  %v4349_v56 = vor.u32 %v4348_v21, %v4344_v30  ;;  %v6095_v39 = vld [vmem:[%s7093_s22 + $0x80] sm:$0x1] }
  0xcc   : > { %v4331_v52 = vsel %vm7140_vm4, %v4326_v17, %v4330_v25  ;;  %v4376_v42 = vshll.u32 %v6089_v18, 16  ;;  %v4381_v6 = vshrl.u32 %v6090_v37, 16  ;;  %6494 = vmatmul.mubr.msk.bf16.gmra.mrb[20].mxu1 %vm322_vm1, %v5740_v8  ;;  %v4363_v46 = vor.u32 %v4362_v22, %v4359_v60 }
  0xcd   : > { %v6122_v35 = vcombine.low %v4321_v33, %v4331_v52  ;;  %v4345_v45 = vsel %vm7140_vm4, %v4340_v27, %v4344_v30  ;;  %v4372_v50 = vrot.slane %v4370_v32, 4  ;;  %6497 = vmatprep.mubr.msk.bf16.mxu1 %vm322_vm1, %v5741_v29  ;;  %v4350_v36 = vrot.slane %v4349_v56, 4  ;;  %v6094_v29 = vld [vmem:[%s7093_s22 + $0x7c] sm:$0xf]  ;;  %v6100_v52 = vld [vmem:[%s7093_s22 + $0x94] sm:$0xf] }
  0xce   : > { %v4378_v53 = vrot.slane %v4376_v42, 5  ;;  %v4383_v12 = vrot.slane %v4381_v6, 4  ;;  %v4384_v55 = vshll.u32 %v6090_v37, 16  ;;  %v4364_v49 = vrot.slane %v4363_v46, 4  ;;  %v6101_v42 = vld [vmem:[%s7093_s22 + $0x98] sm:$0x1] }
  0xcf   : > { %v4373_v57 = vor.u32 %v4372_v50, %v4368_v23  ;;  %v4390_v8 = vshll.u32 %v6091_v34, 16  ;;  %v4394_v28 = vshrl.u32 %v6091_v34, 16  ;;  %v4355_v58 = vsel %vm7140_vm4, %v4350_v36, %v4354_v38  ;;  %v6098_v38 = vld [vmem:[%s7093_s22 + $0x8c] sm:$0x1]  ;;  %v6102_v50 = vld [vmem:[%s7093_s22 + $0x9c] sm:$0xf] }
  0xd0   : > { %6648 = vmatmul.mubr.msk.bf16.gmra.mrb[4].mxu0 %vm322_vm1, %v7855_v44  ;;  %v4386_v1 = vrot.slane %v4384_v55, 5  ;;  %v4400_v41 = vshll.u32 %v6092_v54, 16  ;;  %v4405_v63 = vshrl.u32 %v6093_v51, 16  ;;  %v6123_v2 = vcombine.low %v4345_v45, %v4355_v58  ;;  %v6099_v54 = vld [vmem:[%s7093_s22 + $0x90] sm:$0xf] }
  0xd1   : > { %6651 = vmatprep.mubr.msk.bf16.mxu0 %vm322_vm1, %v6122_v35  ;;  %v4369_v5 = vsel %vm7140_vm4, %v4364_v49, %v4368_v23  ;;  %v4374_v10 = vrot.slane %v4373_v57, 4  ;;  %v4392_v25 = vrot.slane %v4390_v8, 5  ;;  %v4396_v44 = vrot.slane %v4394_v28, 4 }
  0xd2   : > { %v4387_v13 = vor.u32 %v4386_v1, %v4383_v12  ;;  %v4402_v24 = vrot.slane %v4400_v41, 5  ;;  %v4407_v30 = vrot.slane %v4405_v63, 4  ;;  %v4408_v40 = vshll.u32 %v6093_v51, 16  ;;  %v7018_v51 = vld [vmem:[%s7093_s22 + $0xc] sm:$0xff]   ;;  %v6103_v63 = vld [vmem:[%s7093_s22 + $0xa0] sm:$0xf] }
  0xd3   : > { %v4379_v31 = vsel %vm7140_vm4, %v4374_v10, %v4378_v53  ;;  %v4414_v16 = vshll.u32 %v6094_v29, 16  ;;  %v4418_v33 = vshrl.u32 %v6094_v29, 16  ;;  %v4397_v61 = vor.u32 %v4396_v44, %v4392_v25 }
  0xd4   : > { %v6124_v9 = vcombine.low %v4369_v5, %v4379_v31  ;;  %v4388_v18 = vrot.slane %v4387_v13, 4  ;;  %v4424_v20 = vshll.u32 %v6095_v39, 16  ;;  %6498 = vmatmul.mubr.msk.bf16.gmra.mrb[24].mxu1 %vm322_vm1, %v5742_v26  ;;  %v4410_v37 = vrot.slane %v4408_v40, 5  ;;  %v6104_v13 = vld [vmem:[%s7093_s22 + $0xa4] sm:$0x1]  ;;  %v7019_v31 = vld [vmem:[%s7093_s22 + $0x18] sm:$0xff]  }
  0xd5   : > { %v4416_v17 = vrot.slane %v4414_v16, 5  ;;  %v4420_v21 = vrot.slane %v4418_v33, 4  ;;  %v4429_v60 = vshrl.u32 %v6096_v47, 16  ;;  %6501 = vmatprep.mubr.msk.bf16.mxu1 %vm322_vm1, %v5743_v7  ;;  %v4398_v27 = vrot.slane %v4397_v61, 4 }
  0xd6   : > { %v4393_v34 = vsel %vm7140_vm4, %v4388_v18, %v4392_v25  ;;  %v4426_v15 = vrot.slane %v4424_v20, 5  ;;  %v4432_v48 = vshll.u32 %v6096_v47, 16  ;;  %v4411_v22 = vor.u32 %v4410_v37, %v4407_v30  ;;  %v6106_v18 = vld [vmem:[%s7093_s22 + $0xac] sm:$0xf] }
  0xd7   : > { %v4421_v26 = vor.u32 %v4420_v21, %v4416_v17  ;;  %v4431_v23 = vrot.slane %v4429_v60, 4  ;;  %v4438_v32 = vshll.u32 %v6097_v59, 16  ;;  %v4403_v11 = vsel %vm7140_vm4, %v4398_v27, %v4402_v24  ;;  %v6107_v21 = vld [vmem:[%s7093_s22 + $0xb0] sm:$0x1] }
  0xd8   : > { %6652 = vmatmul.mubr.msk.bf16.gmra.mrb[8].mxu0 %vm322_vm1, %v6123_v2  ;;  %v4434_v19 = vrot.slane %v4432_v48, 5  ;;  %v4442_v7 = vshrl.u32 %v6097_v59, 16  ;;  %v4448_v56 = vshll.u32 %v6098_v38, 16  ;;  %v6125_v6 = vcombine.low %v4393_v34, %v4403_v11  ;;  %v6105_v59 = vld [vmem:[%s7093_s22 + $0xa8] sm:$0xf] }
  0xd9   : > { %6655 = vmatprep.mubr.msk.bf16.mxu0 %vm322_vm1, %v6124_v9  ;;  %v4412_v35 = vrot.slane %v4411_v22, 4  ;;  %v4422_v45 = vrot.slane %v4421_v26, 4  ;;  %v4440_v46 = vrot.slane %v4438_v32, 5  ;;  %v4453_v55 = vshrl.u32 %v6099_v54, 16  ;;  %v7020_v38 = vld [vmem:[%s7093_s22 + $0x24] sm:$0xff]  }
  0xda   : > { %v4435_v36 = vor.u32 %v4434_v19, %v4431_v23  ;;  %v4444_v53 = vrot.slane %v4442_v7, 4  ;;  %v4450_v12 = vrot.slane %v4448_v56, 5  ;;  %v4456_v8 = vshll.u32 %v6099_v54, 16  ;;  %v6108_v48 = vld [vmem:[%s7093_s22 + $0xb4] sm:$0xf] }
  0xdb   : > { %v4417_v49 = vsel %vm7140_vm4, %v4412_v35, %v4416_v17  ;;  %v4427_v57 = vsel %vm7140_vm4, %v4422_v45, %v4426_v15  ;;  %v4462_v28 = vshll.u32 %v6100_v52, 16  ;;  %v4455_v29 = vrot.slane %v4453_v55, 4  ;;  %v6109_v35 = vld [vmem:[%s7093_s22 + $0xb8] sm:$0xf]  ;;  %v6110_v55 = vld [vmem:[%s7093_s22 + $0xbc] sm:$0x1] }
  0xdc   : > { %v6126_v58 = vcombine.low %v4417_v49, %v4427_v57  ;;  %v4436_v1 = vrot.slane %v4435_v36, 4  ;;  %v4445_v41 = vor.u32 %v4444_v53, %v4440_v46  ;;  %6502 = vmatmul.mubr.msk.bf16.gmra.mrb[28].mxu1 %vm322_vm1, %v5744_v3  ;;  %v4458_v2 = vrot.slane %v4456_v8, 5  ;;  %v7021_v36 = vld [vmem:[%s7093_s22 + $0x30] sm:$0xff]   ;;  %v7022_v8 = vld [vmem:[%s7093_s22 + $0x3c] sm:$0xff]  }
  0xdd   : > { %v4464_v5 = vrot.slane %v4462_v28, 5  ;;  %v4466_v10 = vshrl.u32 %v6100_v52, 16  ;;  %v4472_v25 = vshll.u32 %v6101_v42, 16  ;;  %6507 = vmatprep.mubr.msk.bf16.mxu1 %vm322_vm1, %v7018_v51  ;;  %v4477_v44 = vshrl.u32 %v6102_v50, 16 }
  0xde   : > { %v4441_v39 = vsel %vm7140_vm4, %v4436_v1, %v4440_v46  ;;  %v4446_v47 = vrot.slane %v4445_v41, 4  ;;  %v4480_v24 = vshll.u32 %v6102_v50, 16  ;;  %v4459_v30 = vor.u32 %v4458_v2, %v4455_v29  ;;  %v6111_v41 = vld [vmem:[%s7093_s22 + $0xc0] sm:$0xf] }
  0xdf   : > { %v4468_v62 = vrot.slane %v4466_v10, 4  ;;  %v4474_v14 = vrot.slane %v4472_v25, 5  ;;  %v4486_v3 = vshll.u32 %v6103_v63, 16  ;;  %v4479_v16 = vrot.slane %v4477_v44, 4  ;;  %v6112_v10 = vld [vmem:[%s7093_s22 + $0xc4] sm:$0xf] }
  0xe0   : > { %6656 = vmatmul.mubr.msk.bf16.gmra.mrb[12].mxu0 %vm322_vm1, %v6125_v6  ;;  %v4451_v40 = vsel %vm7140_vm4, %v4446_v47, %v4450_v12  ;;  %v4482_v33 = vrot.slane %v4480_v24, 5  ;;  %v4490_v9 = vshrl.u32 %v6103_v63, 16  ;;  %v4460_v20 = vrot.slane %v4459_v30, 4  ;;  %v6113_v44 = vld [vmem:[%s7093_s22 + $0xc8] sm:$0x1] }
  0xe1   : > { %6659 = vmatprep.mubr.msk.bf16.mxu0 %vm322_vm1, %v6126_v58  ;;  %v6127_v61 = vcombine.low %v4441_v39, %v4451_v40  ;;  %v4469_v37 = vor.u32 %v4468_v62, %v4464_v5  ;;  %v4488_v17 = vrot.slane %v4486_v3, 5  ;;  %v4496_v27 = vshll.u32 %v6104_v13, 16 }
  0xe2   : > { %v4483_v60 = vor.u32 %v4482_v33, %v4479_v16  ;;  %v4492_v34 = vrot.slane %v4490_v9, 4  ;;  %v4501_v15 = vshrl.u32 %v6105_v59, 16  ;;  %v4465_v22 = vsel %vm7140_vm4, %v4460_v20, %v4464_v5  ;;  %v6114_v16 = vld [vmem:[%s7093_s22 + $0xcc] sm:$0xf]  ;;  %v6115_v20 = vld [vmem:[%s7093_s22 + $0xd0] sm:$0xf] }
  0xe3   : > { %v4470_v26 = vrot.slane %v4469_v37, 4  ;;  %v4504_v23 = vshll.u32 %v6105_v59, 16  ;;  %v4510_v32 = vshll.u32 %v6106_v18, 16  ;;  %v4498_v11 = vrot.slane %v4496_v27, 5 }
  0xe4   : > { %v4484_v54 = vrot.slane %v4483_v60, 4  ;;  %v4493_v52 = vor.u32 %v4492_v34, %v4488_v17  ;;  %v4503_v19 = vrot.slane %v4501_v15, 4  ;;  %6508 = vmatmul.mubr.msk.bf16.vlgmr.msra.gmra.mrb[0].mxu1 %vm322_vm1, %v7019_v31  ;;  %v4514_v6 = vshrl.u32 %v6106_v18, 16  ;;  %v6116_v60 = vld [vmem:[%s7093_s22 + $0xd4] sm:$0x1]  ;;  %v7023_v34 = vld [vmem:[%s7093_s22 + $0x48] sm:$0xff]  }
  0xe5   : > { %v4475_v7 = vsel %vm7140_vm4, %v4470_v26, %v4474_v14  ;;  %v4506_v56 = vrot.slane %v4504_v23, 5  ;;  %v4512_v42 = vrot.slane %v4510_v32, 5  ;;  %6511 = vmatprep.mubr.msk.bf16.mxu1 %vm322_vm1, %v7020_v38  ;;  %6710 = vmatpush3.bf16.msra.mxu1 %v7081_v4  ;;  %v4520_v51 = vshll.u32 %v6107_v21, 16  ;;  %v6150_v26 = vld [vmem:[%s7093_s22 + $0x18] sm:$0xe] }
  0xe6   : > { %v6128_v45 = vcombine.low %v4465_v22, %v4475_v7  ;;  %v4489_v46 = vsel %vm7140_vm4, %v4484_v54, %v4488_v17  ;;  %v4494_v50 = vrot.slane %v4493_v52, 4  ;;  %v4516_v12 = vrot.slane %v4514_v6, 4  ;;  %v6151_v23 = vld [vmem:[%s7093_s22 + $0x1c] sm:$0xf]  ;;  %v7024_v32 = vld [vmem:[%s7093_s22 + $0x54] sm:$0xff]  }
  0xe7   : > { %v4507_v53 = vor.u32 %v4506_v56, %v4503_v19  ;;  %v4525_v49 = vshrl.u32 %v6108_v48, 16  ;;  %v4528_v57 = vshll.u32 %v6108_v48, 16  ;;  %v4522_v28 = vrot.slane %v4520_v51, 5  ;;  %v6152_v7 = vld [vmem:[%s7093_s22 + $0x20] sm:$0x1] }
  0xe8   : > { %6660 = vmatmul.mubr.msk.bf16.gmra.mrb[16].mxu0 %vm322_vm1, %v6127_v61  ;;  %v4499_v4 = vsel %vm7140_vm4, %v4494_v50, %v4498_v11  ;;  %v4534_v58 = vshll.u32 %v6109_v35, 16  ;;  %v4538_v1 = vshrl.u32 %v6109_v35, 16  ;;  %v4517_v2 = vor.u32 %v4516_v12, %v4512_v42  ;;  %v6154_v56 = vld [vmem:[%s7093_s22 + $0x28] sm:$0xf] }
  0xe9   : > { %6663 = vmatprep.mubr.msk.bf16.mxu0 %vm322_vm1, %v6128_v45  ;;  %v6129_v29 = vcombine.low %v4489_v46, %v4499_v4  ;;  %v4508_v63 = vrot.slane %v4507_v53, 4  ;;  %v4527_v5 = vrot.slane %v4525_v49, 4  ;;  %v4530_v25 = vrot.slane %v4528_v57, 5  ;;  %v6153_v45 = vld [vmem:[%s7093_s22 + $0x24] sm:$0xe] }
  0xea   : > { %v4536_v39 = vrot.slane %v4534_v58, 5  ;;  %v4540_v47 = vrot.slane %v4538_v1, 4  ;;  %v4544_v13 = vshll.u32 %v6110_v55, 16  ;;  %v4518_v30 = vrot.slane %v4517_v2, 4  ;;  %v6155_v57 = vld [vmem:[%s7093_s22 + $0x2c] sm:$0x1] }
  0xeb   : > { %v4513_v24 = vsel %vm7140_vm4, %v4508_v63, %v4512_v42  ;;  %v4549_v62 = vshrl.u32 %v6111_v41, 16  ;;  %v4552_v14 = vshll.u32 %v6111_v41, 16  ;;  %v4531_v3 = vor.u32 %v4530_v25, %v4527_v5  ;;  %v6156_v1 = vld [vmem:[%s7093_s22 + $0x30] sm:$0xe]  ;;  %v6157_v5 = vld [vmem:[%s7093_s22 + $0x34] sm:$0xf] }
  0xec   : > { %v4541_v59 = vor.u32 %v4540_v47, %v4536_v39  ;;  %v4546_v31 = vrot.slane %v4544_v13, 5  ;;  %v4558_v40 = vshll.u32 %v6112_v10, 16  ;;  %6512 = vmatmul.mubr.msk.bf16.gmra.mrb[4].mxu1 %vm322_vm1, %v7021_v36  ;;  %v4523_v33 = vsel %vm7140_vm4, %v4518_v30, %v4522_v28  ;;  %v6158_v13 = vld [vmem:[%s7093_s22 + $0x38] sm:$0x1] }
  0xed   : > { %v4551_v9 = vrot.slane %v4549_v62, 4  ;;  %v4554_v18 = vrot.slane %v4552_v14, 5  ;;  %v4562_v61 = vshrl.u32 %v6112_v10, 16  ;;  %6515 = vmatprep.mubr.msk.bf16.mxu1 %vm322_vm1, %v7022_v8  ;;  %v6130_v37 = vcombine.low %v4513_v24, %v4523_v33  ;;  %v6159_v62 = vld [vmem:[%s7093_s22 + $0x3c] sm:$0xe]  ;;  %v7025_v14 = vld [vmem:[%s7093_s22 + $0x60] sm:$0xff]  }
  0xee   : > { %v4532_v17 = vrot.slane %v4531_v3, 4  ;;  %v4542_v21 = vrot.slane %v4541_v59, 4  ;;  %v4560_v38 = vrot.slane %v4558_v40, 5  ;;  %v4568_v48 = vshll.u32 %v6113_v44, 16  ;;  %v7026_v33 = vld [vmem:[%s7093_s22 + $0x6c] sm:$0xff]  }
  0xef   : > { %v4555_v27 = vor.u32 %v4554_v18, %v4551_v9  ;;  %v4564_v15 = vrot.slane %v4562_v61, 4  ;;  %v4573_v22 = vshrl.u32 %v6114_v16, 16  ;;  %v4576_v11 = vshll.u32 %v6114_v16, 16  ;;  %v6160_v16 = vld [vmem:[%s7093_s22 + $0x40] sm:$0xf] }
  0xf0   : > { %6664 = vmatmul.mubr.msk.bf16.gmra.mrb[20].mxu0 %vm322_vm1, %v6129_v29  ;;  %v4537_v54 = vsel %vm7140_vm4, %v4532_v17, %v4536_v39  ;;  %v4547_v52 = vsel %vm7140_vm4, %v4542_v21, %v4546_v31  ;;  %v4582_v19 = vshll.u32 %v6115_v20, 16  ;;  %v4570_v35 = vrot.slane %v4568_v48, 5 }
  0xf1   : > { %6667 = vmatprep.mubr.msk.bf16.mxu0 %vm322_vm1, %v6130_v37  ;;  %v4556_v42 = vrot.slane %v4555_v27, 4  ;;  %v4565_v6 = vor.u32 %v4564_v15, %v4560_v38  ;;  %v4575_v46 = vrot.slane %v4573_v22, 4  ;;  %v4578_v50 = vrot.slane %v4576_v11, 5  ;;  %v6163_v37 = vld [vmem:[%s7093_s22 + $0x4c] sm:$0xf] }
  0xf2   : > { %v4584_v51 = vrot.slane %v4582_v19, 5  ;;  %v4586_v36 = vshrl.u32 %v6115_v20, 16  ;;  %v6131_v53 = vcombine.low %v4537_v54, %v4547_v52  ;;  %v4592_v49 = vshll.u32 %v6116_v60, 16  ;;  %v6162_v20 = vld [vmem:[%s7093_s22 + $0x48] sm:$0xe] }
  0xf3   : > { %v4561_v12 = vsel %vm7140_vm4, %v4556_v42, %v4560_v38  ;;  %v4566_v55 = vrot.slane %v4565_v6, 4  ;;  %v4579_v8 = vor.u32 %v4578_v50, %v4575_v46  ;;  %v6198_v28 = vrot.slane %v6150_v26, 9  ;;  %v6161_v60 = vld [vmem:[%s7093_s22 + $0x44] sm:$0x1]  ;;  %v6165_v27 = vld [vmem:[%s7093_s22 + $0x54] sm:$0xe] }
  0xf4   : > { %v4588_v4 = vrot.slane %v4586_v36, 4  ;;  %v5052_v58 = vrot.slane %v6151_v23, 5  ;;  %6516 = vmatmul.mubr.msk.bf16.gmra.mrb[8].mxu1 %vm322_vm1, %v7023_v34  ;;  %v4594_v29 = vrot.slane %v4592_v49, 5  ;;  %v5055_v63 = vrot.slane %v6152_v7, 5  ;;  %v6164_v34 = vld [vmem:[%s7093_s22 + $0x50] sm:$0x1] }
  0xf5   : > { %v4571_v41 = vsel %vm7140_vm4, %v4566_v55, %v4570_v35  ;;  %v5059_v2 = vrot.slane %v6154_v56, 5  ;;  %6519 = vmatprep.mubr.msk.bf16.mxu1 %vm322_vm1, %v7024_v32  ;;  %v4580_v25 = vrot.slane %v4579_v8, 4  ;;  %v6199_v47 = vrot.slane %v6153_v45, 9  ;;  %v6166_v23 = vld [vmem:[%s7093_s22 + $0x58] sm:$0xf] }
  0xf6   : > { %v6132_v10 = vcombine.low %v4561_v12, %v4571_v41  ;;  %v4589_v39 = vor.u32 %v4588_v4, %v4584_v51  ;;  %v5054_v44 = vrot.slane %v5052_v58, 4  ;;  %v5062_v30 = vrot.slane %v6155_v57, 5  ;;  %v6167_v19 = vld [vmem:[%s7093_s22 + $0x5c] sm:$0x1]  ;;  %v5850_v7 = vld [vmem:[%s7093_s22 + $0x6c] sm:$0xf] }
  0xf7   : > { %v5061_v24 = vrot.slane %v5059_v2, 4  ;;  %v5053_v59 = vsel %vm7215_vm7, %v6198_v28, %v5052_v58  ;;  %v6200_v31 = vrot.slane %v6156_v1, 9  ;;  %v5066_v40 = vrot.slane %v6157_v5, 5  ;;  %v5851_v45 = vld [vmem:[%s7093_s22 + $0x70] sm:$0xf]  ;;  %v7027_v41 = vld [vmem:[%s7093_s22 + $0x78] sm:$0xff]  }
  0xf8   : > { %6668 = vmatmul.mubr.msk.bf16.gmra.mrb[24].mxu0 %vm322_vm1, %v6131_v53  ;;  %v4590_v3 = vrot.slane %v4589_v39, 4  ;;  %v4585_v9 = vsel %vm7140_vm4, %v4580_v25, %v4584_v51  ;;  %v5056_v18 = vsel %vm7215_vm7, %v5054_v44, %v5055_v63  ;;  %v5069_v61 = vrot.slane %v6158_v13, 5  ;;  %v5852_v55 = vld [vmem:[%s7093_s22 + $0x74] sm:$0x1]  ;;  %v5853_v57 = vld [vmem:[%s7093_s22 + $0x78] sm:$0xf] }
  0xf9   : > { %6671 = vmatprep.mubr.msk.bf16.mxu0 %vm322_vm1, %v6132_v10  ;;  %v8023_v21 = vsel %vm7215_vm7, %v6199_v47, %v5059_v2  ;;  %v8027_v38 = vsel %vm7215_vm7, %v5061_v24, %v5062_v30  ;;  %v6215_v15 = vcombine.low %v5053_v59, %v5056_v18  ;;  %v5068_v48 = vrot.slane %v5066_v40, 4  ;;  %v5854_v1 = vld [vmem:[%s7093_s22 + $0x7c] sm:$0xf]  ;;  %v7028_v10 = vld [vmem:[%s7093_s22 + $0x84] sm:$0xff]   ;;  %v5855_v24 = vld [vmem:[%s7093_s22 + $0x80] sm:$0x1] }
  0xfa   : > { %v4595_v17 = vsel %vm7140_vm4, %v4590_v3, %v4594_v29  ;;  %v6201_v22 = vrot.slane %v6159_v62, 9  ;;  %v5073_v26 = vrot.slane %v6160_v16, 5  ;;  %v8035_v54 = vsel %vm7215_vm7, %v6200_v31, %v5066_v40  ;;  %v6168_v16 = vld [vmem:[%s7093_s22 + $0x60] sm:$0xe] }
  0xfb   : > { %v6133_v32 = vcombine.low %v4585_v9, %v4595_v17  ;;  %v6202_v52 = vrot.slane %v6162_v20, 9  ;;  %v5080_v11 = vrot.slane %v6163_v37, 5  ;;  %v8042_v56 = vsel %vm7215_vm7, %v5068_v48, %v5069_v61  ;;  %v6172_v37 = vld [vmem:[%s7093_s22 + $0x70] sm:$0xf]  ;;  %v6170_v48 = vld [vmem:[%s7093_s22 + $0x68] sm:$0x1] }
  0xfc   : > { %6520 = vmatmul.mubr.msk.bf16.gmra.mrb[12].mxu1 %vm322_vm1, %v7025_v14  ;;  %v5075_v42 = vrot.slane %v5073_v26, 4  ;;  %v5076_v6 = vrot.slane %v6161_v60, 5  ;;  %v6203_v35 = vrot.slane %v6165_v27, 9  ;;  %v6216_v46 = vcombine.low %v8023_v21, %v8027_v38 }
  0xfd   : > { %6523 = vmatprep.mubr.msk.bf16.mxu1 %vm322_vm1, %v7026_v33  ;;  %v5083_v50 = vrot.slane %v6164_v34, 5  ;;  %v5087_v51 = vrot.slane %v6166_v23, 5  ;;  %v6217_v36 = vcombine.low %v8035_v54, %v8042_v56  ;;  %v8052_v53 = vsel %vm7215_vm7, %v6201_v22, %v5073_v26  ;;  %v6169_v33 = vld [vmem:[%s7093_s22 + $0x64] sm:$0xf]  ;;  %v6171_v34 = vld [vmem:[%s7093_s22 + $0x6c] sm:$0xe] }
  0xfe   : > { %v8056_v12 = vsel %vm7215_vm7, %v6202_v52, %v5080_v11  ;;  %v2626_v49 = vshrl.u32 %v5850_v7, 16  ;;  %v5082_v8 = vrot.slane %v5080_v11, 4  ;;  %v5090_v4 = vrot.slane %v6167_v19, 5  ;;  %v7029_v23 = vld [vmem:[%s7093_s22 + $0x90] sm:$0xff]   ;;  %v5856_v19 = vld [vmem:[%s7093_s22 + $0x84] sm:$0xf] }
  0xff   : > { %v2629_v28 = vshll.u32 %v5850_v7, 16  ;;  %v2635_v58 = vshll.u32 %v5851_v45, 16  ;;  %v8066_v29 = vsel %vm7215_vm7, %v5075_v42, %v5076_v6  ;;  %v8070_v63 = vsel %vm7215_vm7, %v6203_v35, %v5087_v51  ;;  %v6173_v6 = vld [vmem:[%s7093_s22 + $0x74] sm:$0x1] }
 0x100   : > { %6672 = vmatmul.mubr.msk.bf16.gmra.mrb[28].mxu0 %vm322_vm1, %v6133_v32  ;;  %v2628_v2 = vrot.slane %v2626_v49, 4  ;;  %v2639_v5 = vshrl.u32 %v5851_v45, 16  ;;  %v5089_v25 = vrot.slane %v5087_v51, 4  ;;  %v2645_v13 = vshll.u32 %v5852_v55, 16  ;;  %v5857_v45 = vld [vmem:[%s7093_s22 + $0x88] sm:$0xf] }
 0x101   : > { %6677 = vmatprep.mubr.msk.bf16.mxu0 %vm322_vm1, %v6215_v15  ;;  %v2631_v39 = vrot.slane %v2629_v28, 5  ;;  %v2637_v47 = vrot.slane %v2635_v58, 5  ;;  %v2650_v30 = vshrl.u32 %v5853_v57, 16  ;;  %v2653_v62 = vshll.u32 %v5853_v57, 16  ;;  %v5858_v57 = vld [vmem:[%s7093_s22 + $0x8c] sm:$0x1] }
 0x102   : > { %v2641_v44 = vrot.slane %v2639_v5, 4  ;;  %v2659_v14 = vshll.u32 %v5854_v1, 16  ;;  %v8076_v3 = vsel %vm7215_vm7, %v5082_v8, %v5083_v50  ;;  %v2647_v31 = vrot.slane %v2645_v13, 5 }
 0x103   : > { %v2632_v59 = vor.u32 %v2631_v39, %v2628_v2  ;;  %v2663_v40 = vshrl.u32 %v5854_v1, 16  ;;  %v2652_v18 = vrot.slane %v2650_v30, 4  ;;  %v2655_v61 = vrot.slane %v2653_v62, 5  ;;  %v5861_v39 = vld [vmem:[%s7093_s22 + $0x98] sm:$0x1] }
 0x104   : > { %6524 = vmatmul.mubr.msk.bf16.gmra.mrb[16].mxu1 %vm322_vm1, %v7027_v41  ;;  %v2642_v9 = vor.u32 %v2641_v44, %v2637_v47  ;;  %v8081_v20 = vrot.slane %v2659_v14, 5  ;;  %v8087_v17 = vsel %vm7215_vm7, %v5089_v25, %v5090_v4  ;;  %v2669_v60 = vshll.u32 %v5855_v24, 16  ;;  %v5859_v4 = vld [vmem:[%s7093_s22 + $0x90] sm:$0xf]  ;;  %v6174_v30 = vld [vmem:[%s7093_s22 + $0x78] sm:$0xe] }
 0x105   : > { %6527 = vmatprep.mubr.msk.bf16.mxu1 %vm322_vm1, %v7028_v10  ;;  %v2633_v21 = vrot.slane %v2632_v59, 4  ;;  %v2665_v38 = vrot.slane %v2663_v40, 4  ;;  %v2656_v15 = vor.u32 %v2655_v61, %v2652_v18  ;;  %v6204_v22 = vrot.slane %v6168_v16, 9  ;;  %v6176_v18 = vld [vmem:[%s7093_s22 + $0x80] sm:$0x1] }
 0x106   : > { %v2643_v27 = vrot.slane %v2642_v9, 4  ;;  %v5094_v26 = vrot.slane %v6169_v33, 5  ;;  %v6218_v32 = vcombine.low %v8052_v53, %v8066_v29  ;;  %v5101_v11 = vrot.slane %v6172_v37, 5  ;;  %v5860_v29 = vld [vmem:[%s7093_s22 + $0x94] sm:$0xf]  ;;  %v7031_v37 = vld [vmem:[%s7093_s22 + $0xa8] sm:$0xff]  }
 0x107   : > { %v2638_v54 = vsel %vm7140_vm4, %v2633_v21, %v2637_v47  ;;  %v2666_v52 = vor.u32 %v2665_v38, %v8081_v20  ;;  %v6219_v7 = vcombine.low %v8056_v12, %v8076_v3  ;;  %v8104_v42 = vrot.slane %v2656_v15, 4  ;;  %v6177_v61 = vld [vmem:[%s7093_s22 + $0x84] sm:$0xe]  ;;  %v7032_v15 = vld [vmem:[%s7093_s22 + $0xb4] sm:$0xff]  }
 0x108   : > { %6678 = vmatmul.mubr.msk.bf16.vlgmr.msra.gmra.mrb[0].mxu0 %vm322_vm1, %v6216_v46  ;;  %v2648_v56 = vsel %vm7140_vm4, %v2643_v27, %v2647_v31  ;;  %v6205_v35 = vrot.slane %v6171_v34, 9  ;;  %v7030_v46 = vld [vmem:[%s7093_s22 + $0x9c] sm:$0xff]   ;;  %v6220_v50 = vcombine.low %v8070_v63, %v8087_v17  ;;  %v8111_v51 = vrot.slane %v2669_v60, 5  ;;  %v6178_v27 = vld [vmem:[%s7093_s22 + $0x88] sm:$0xf] }
 0x109   : > { %6681 = vmatprep.mubr.msk.bf16.mxu0 %vm322_vm1, %v6217_v36  ;;  %v5096_v36 = vrot.slane %v5094_v26, 4  ;;  %v5097_v53 = vrot.slane %v6170_v48, 5  ;;  %v8113_v55 = vcombine.low %v2638_v54, %v2648_v56  ;;  %v8115_v12 = vrot.slane %v2666_v52, 4  ;;  %v6175_v31 = vld [vmem:[%s7093_s22 + $0x7c] sm:$0xf] }
 0x10a   : > { %v8119_v49 = vsel %vm7215_vm7, %v6204_v22, %v5094_v26  ;;  %v2674_v8 = vshrl.u32 %v5856_v19, 16  ;;  %v5103_v28 = vrot.slane %v5101_v11, 4  ;;  %v5104_v58 = vrot.slane %v6173_v6, 5  ;;  %v6179_v56 = vld [vmem:[%s7093_s22 + $0x8c] sm:$0x1] }
 0x10b   : > { %v2677_v1 = vshll.u32 %v5856_v19, 16  ;;  %v2683_v41 = vshll.u32 %v5857_v45, 16  ;;  %v2662_v2 = vsel %vm7140_vm4, %v8104_v42, %v8081_v20  ;;  %v8131_v5 = vsel %vm7215_vm7, %v6205_v35, %v5101_v11 }
 0x10c   : > { %6528 = vmatmul.mubr.msk.bf16.gmra.mrb[20].mxu1 %vm322_vm1, %v7029_v23  ;;  %v2676_v10 = vrot.slane %v2674_v8, 4  ;;  %v2687_v25 = vshrl.u32 %v5857_v45, 16  ;;  %v8137_v47 = vsel %vm7215_vm7, %v5096_v36, %v5097_v53  ;;  %v2693_v24 = vshll.u32 %v5858_v57, 16  ;;  %v5862_v45 = vld [vmem:[%s7093_s22 + $0x9c] sm:$0xf] }
 0x10d   : > { %6531 = vmatprep.mubr.msk.bf16.mxu1 %vm322_vm1, %v7030_v46  ;;  %v2679_v13 = vrot.slane %v2677_v1, 5  ;;  %v8139_v44 = vrot.slane %v2683_v41, 5  ;;  %v2698_v14 = vshrl.u32 %v5859_v4, 16  ;;  %v2701_v3 = vshll.u32 %v5859_v4, 16  ;;  %v5863_v8 = vld [vmem:[%s7093_s22 + $0xa0] sm:$0xf] }
 0x10e   : > { %v2689_v62 = vrot.slane %v2687_v25, 4  ;;  %v2707_v59 = vshll.u32 %v5860_v29, 16  ;;  %v8146_v40 = vsel %vm7215_vm7, %v5103_v28, %v5104_v58  ;;  %v2711_v33 = vshrl.u32 %v5860_v29, 16  ;;  %v5865_v25 = vld [vmem:[%s7093_s22 + $0xa8] sm:$0xf] }
 0x10f   : > { %v2680_v16 = vor.u32 %v2679_v13, %v2676_v10  ;;  %v2717_v9 = vshll.u32 %v5861_v39, 16  ;;  %v2700_v38 = vrot.slane %v2698_v14, 4  ;;  %v2703_v60 = vrot.slane %v2701_v3, 5 }
 0x110   : > { %6682 = vmatmul.mubr.msk.bf16.gmra.mrb[4].mxu0 %vm322_vm1, %v6218_v32  ;;  %v2690_v21 = vor.u32 %v2689_v62, %v8139_v44  ;;  %v8153_v34 = vrot.slane %v2707_v59, 5  ;;  %v8159_v22 = vrot.slane %v2693_v24, 5  ;;  %v2713_v26 = vrot.slane %v2711_v33, 4  ;;  %v5866_v24 = vld [vmem:[%s7093_s22 + $0xac] sm:$0xf] }
 0x111   : > { %6685 = vmatprep.mubr.msk.bf16.mxu0 %vm322_vm1, %v6219_v7  ;;  %v8157_v48 = vrot.slane %v2680_v16, 4  ;;  %v6206_v23 = vrot.slane %v6174_v30, 9  ;;  %v2704_v54 = vor.u32 %v2703_v60, %v2700_v38  ;;  %v5108_v52 = vrot.slane %v6175_v31, 5  ;;  %v7033_v30 = vld [vmem:[%s7093_s22 + $0xc0] sm:$0xff]  }
 0x112   : > { %v8161_v32 = vrot.slane %v2690_v21, 4  ;;  %v5111_v11 = vrot.slane %v6176_v18, 5  ;;  %v2672_v19 = vsel %vm7140_vm4, %v8115_v12, %v8111_v51  ;;  %v2714_v7 = vor.u32 %v2713_v26, %v8153_v34  ;;  %v5869_v12 = vld [vmem:[%s7093_s22 + $0xb8] sm:$0xf] }
 0x113   : > { %v6207_v6 = vrot.slane %v6177_v61, 9  ;;  %v5115_v35 = vrot.slane %v6178_v27, 5  ;;  %v6221_v46 = vcombine.low %v8119_v49, %v8137_v47  ;;  %v8173_v36 = vrot.slane %v2704_v54, 4  ;;  %v6180_v61 = vld [vmem:[%s7093_s22 + $0x90] sm:$0xe] }
 0x114   : > { %6532 = vmatmul.mubr.msk.bf16.gmra.mrb[24].mxu1 %vm322_vm1, %v7031_v37  ;;  %v8175_v53 = vrot.slane %v2717_v9, 5  ;;  %v5110_v57 = vrot.slane %v5108_v52, 4  ;;  %v6222_v4 = vcombine.low %v8131_v5, %v8146_v40  ;;  %v2686_v28 = vsel %vm7140_vm4, %v8157_v48, %v8139_v44  ;;  %v5864_v5 = vld [vmem:[%s7093_s22 + $0xa4] sm:$0x1]  ;;  %v5867_v40 = vld [vmem:[%s7093_s22 + $0xb0] sm:$0x1] }
 0x115   : > { %6535 = vmatprep.mubr.msk.bf16.mxu1 %vm322_vm1, %v7032_v15  ;;  %v2696_v49 = vsel %vm7140_vm4, %v8161_v32, %v8159_v22  ;;  %v2715_v58 = vrot.slane %v2714_v7, 4  ;;  %v5109_v1 = vsel %vm7215_vm7, %v6206_v23, %v5108_v52  ;;  %v8195_v29 = vsel %vm7215_vm7, %v6207_v6, %v5115_v35  ;;  %v6182_v27 = vld [vmem:[%s7093_s22 + $0x98] sm:$0x1]  ;;  %v6184_v23 = vld [vmem:[%s7093_s22 + $0xa0] sm:$0xf] }
 0x116   : > { %v5112_v41 = vsel %vm7215_vm7, %v5110_v57, %v5111_v11  ;;  %v2722_v10 = vshrl.u32 %v5862_v45, 16  ;;  %v5117_v39 = vrot.slane %v5115_v35, 4  ;;  %v5118_v47 = vrot.slane %v6179_v56, 5  ;;  %v5868_v57 = vld [vmem:[%s7093_s22 + $0xb4] sm:$0xf] }
 0x117   : > { %v2725_v13 = vshll.u32 %v5862_v45, 16  ;;  %v2731_v44 = vshll.u32 %v5863_v8, 16  ;;  %v2710_v62 = vsel %vm7140_vm4, %v8173_v36, %v8153_v34  ;;  %v2720_v63 = vsel %vm7140_vm4, %v2715_v58, %v8175_v53  ;;  %v6181_v34 = vld [vmem:[%s7093_s22 + $0x94] sm:$0xf]  ;;  %v6183_v45 = vld [vmem:[%s7093_s22 + $0x9c] sm:$0xe] }
 0x118   : > { %6686 = vmatmul.mubr.msk.bf16.gmra.mrb[8].mxu0 %vm322_vm1, %v6220_v50  ;;  %v2724_v17 = vrot.slane %v2722_v10, 4  ;;  %v2735_v50 = vshrl.u32 %v5863_v8, 16  ;;  %v6223_v14 = vcombine.low %v5109_v1, %v5112_v41  ;;  %v2741_v31 = vshll.u32 %v5864_v5, 16  ;;  %v5870_v5 = vld [vmem:[%s7093_s22 + $0xbc] sm:$0x1] }
 0x119   : > { %6689 = vmatprep.mubr.msk.bf16.mxu0 %vm322_vm1, %v6221_v46  ;;  %v2727_v3 = vrot.slane %v2725_v13, 5  ;;  %v2733_v59 = vrot.slane %v2731_v44, 5  ;;  %v2746_v33 = vshrl.u32 %v5865_v25, 16  ;;  %v2749_v9 = vshll.u32 %v5865_v25, 16  ;;  %v5871_v25 = vld [vmem:[%s7093_s22 + $0xc0] sm:$0xf] }
 0x11a   : > { %v2737_v16 = vrot.slane %v2735_v50, 4  ;;  %v2755_v18 = vshll.u32 %v5866_v24, 16  ;;  %v8217_v37 = vsel %vm7215_vm7, %v5117_v39, %v5118_v47  ;;  %v2743_v38 = vrot.slane %v2741_v31, 5 }
 0x11b   : > { %v2728_v21 = vor.u32 %v2727_v3, %v2724_v17  ;;  %v2759_v60 = vshrl.u32 %v5866_v24, 16  ;;  %v2748_v48 = vrot.slane %v2746_v33, 4  ;;  %v2751_v22 = vrot.slane %v2749_v9, 5  ;;  %v6186_v33 = vld [vmem:[%s7093_s22 + $0xa8] sm:$0xe] }
 0x11c   : > { %6536 = vmatmul.mubr.msk.bf16.gmra.mrb[28].mxu1 %vm322_vm1, %v7033_v30  ;;  %v2738_v15 = vor.u32 %v2737_v16, %v2733_v59  ;;  %v8222_v26 = vrot.slane %v2755_v18, 5  ;;  %v2765_v52 = vshll.u32 %v5867_v40, 16  ;;  %v6208_v11 = vrot.slane %v6180_v61, 9 }
 0x11d   : > { %6557 = vmatprep.mubr.msk.bf16.mxu1 %vm322_vm1, %v8113_v55  ;;  %v2729_v32 = vrot.slane %v2728_v21, 4  ;;  %v2761_v54 = vrot.slane %v2759_v60, 4  ;;  %v2752_v56 = vor.u32 %v2751_v22, %v2748_v48  ;;  %v5122_v6 = vrot.slane %v6181_v34, 5  ;;  %v6187_v21 = vld [vmem:[%s7093_s22 + $0xac] sm:$0xf] }
 0x11e   : > { %v2739_v7 = vrot.slane %v2738_v15, 4  ;;  %v5125_v35 = vrot.slane %v6182_v27, 5  ;;  %v5884_v55 = vcombine.low %v2662_v2, %v2672_v19  ;;  %v5129_v53 = vrot.slane %v6184_v23, 5  ;;  %v5873_v27 = vld [vmem:[%s7093_s22 + $0xc8] sm:$0x1] }
 0x11f   : > { %v2734_v46 = vsel %vm7140_vm4, %v2729_v32, %v2733_v59  ;;  %v2762_v36 = vor.u32 %v2761_v54, %v8222_v26  ;;  %v5885_v8 = vcombine.low %v2686_v28, %v2696_v49  ;;  %v8243_v51 = vcombine.low %v2710_v62, %v2720_v63  ;;  %v6185_v28 = vld [vmem:[%s7093_s22 + $0xa4] sm:$0x1]  ;;  %v6190_v22 = vld [vmem:[%s7093_s22 + $0xb8] sm:$0xf] }
 0x120   : > { %6690 = vmatmul.mubr.msk.bf16.gmra.mrb[12].mxu0 %vm322_vm1, %v6222_v4  ;;  %v2744_v20 = vsel %vm7140_vm4, %v2739_v7, %v2743_v38  ;;  %v5124_v42 = vrot.slane %v5122_v6, 4  ;;  %v6224_v2 = vcombine.low %v8195_v29, %v8217_v37  ;;  %v8251_v19 = vrot.slane %v2765_v52, 5  ;;  %v5872_v29 = vld [vmem:[%s7093_s22 + $0xc4] sm:$0xf]  ;;  %v6188_v38 = vld [vmem:[%s7093_s22 + $0xb0] sm:$0x1] }
 0x121   : > { %6693 = vmatprep.mubr.msk.bf16.mxu0 %vm322_vm1, %v6223_v14  ;;  %v5123_v4 = vsel %vm7215_vm7, %v6208_v11, %v5122_v6  ;;  %v6209_v49 = vrot.slane %v6183_v45, 9  ;;  %v5887_v58 = vcombine.low %v2734_v46, %v2744_v20  ;;  %v2753_v1 = vrot.slane %v2752_v56, 4  ;;  %v6189_v52 = vld [vmem:[%s7093_s22 + $0xb4] sm:$0xe] }
 0x122   : > { %v5126_v41 = vsel %vm7215_vm7, %v5124_v42, %v5125_v35  ;;  %v2770_v10 = vshrl.u32 %v5868_v57, 16  ;;  %v2763_v39 = vrot.slane %v2762_v36, 4  ;;  %v5131_v47 = vrot.slane %v5129_v53, 4  ;;  %v6192_v36 = vld [vmem:[%s7093_s22 + $0xc0] sm:$0xe] }
 0x123   : > { %v2773_v13 = vshll.u32 %v5868_v57, 16  ;;  %v2779_v44 = vshll.u32 %v5869_v12, 16  ;;  %v6225_v24 = vcombine.low %v5123_v4, %v5126_v41  ;;  %v5132_v30 = vrot.slane %v6185_v28, 5  ;;  %v6193_v42 = vld [vmem:[%s7093_s22 + $0xc4] sm:$0xf] }
 0x124   : > { %6558 = vmatmul.mubr.msk.bf16.vlgmr.msra.gmra.mrb[16].mxu1 %vm322_vm1, %v5884_v55  ;;  %v2772_v62 = vrot.slane %v2770_v10, 4  ;;  %v2783_v63 = vshrl.u32 %v5869_v12, 16  ;;  %v5130_v17 = vsel %vm7215_vm7, %v6209_v49, %v5129_v53  ;;  %v2789_v3 = vshll.u32 %v5870_v5, 16  ;;  %v6191_v55 = vld [vmem:[%s7093_s22 + $0xbc] sm:$0x1] }
 0x125   : > { %6561 = vmatprep.mubr.msk.bf16.mxu1 %vm322_vm1, %v5885_v8  ;;  %v2775_v50 = vrot.slane %v2773_v13, 5  ;;  %v2781_v14 = vrot.slane %v2779_v44, 5  ;;  %v2794_v31 = vshrl.u32 %v5871_v25, 16  ;;  %v2797_v40 = vshll.u32 %v5871_v25, 16  ;;  %v6194_v12 = vld [vmem:[%s7093_s22 + $0xc8] sm:$0x1] }
 0x126   : > { %v2785_v59 = vrot.slane %v2783_v63, 4  ;;  %v2803_v16 = vshll.u32 %v5872_v29, 16  ;;  %v2758_v9 = vsel %vm7140_vm4, %v2753_v1, %v8222_v26  ;;  %v2768_v18 = vsel %vm7140_vm4, %v2763_v39, %v8251_v19  ;;  %v6196_v49 = vld [vmem:[%s7093_s22 + $0xd0] sm:$0xf] }
 0x127   : > { %v2776_v61 = vor.u32 %v2775_v50, %v2772_v62  ;;  %v2807_v37 = vshrl.u32 %v5872_v29, 16  ;;  %v5133_v60 = vsel %vm7215_vm7, %v5131_v47, %v5132_v30  ;;  %v2796_v15 = vrot.slane %v2794_v31, 4  ;;  %v6197_v50 = vld [vmem:[%s7093_s22 + $0xd4] sm:$0x1] }
 0x128   : > { %6694 = vmatmul.mubr.msk.bf16.gmra.mrb[16].mxu0 %vm322_vm1, %v6224_v2  ;;  %v2786_v34 = vor.u32 %v2785_v59, %v2781_v14  ;;  %v2799_v48 = vrot.slane %v2797_v40, 5  ;;  %v2805_v23 = vrot.slane %v2803_v16, 5  ;;  %v6210_v54 = vrot.slane %v6186_v33, 9 }
 0x129   : > { %6697 = vmatprep.mubr.msk.bf16.mxu0 %vm322_vm1, %v6225_v24  ;;  %v2777_v26 = vrot.slane %v2776_v61, 4  ;;  %v2809_v32 = vrot.slane %v2807_v37, 4  ;;  %v2791_v7 = vrot.slane %v2789_v3, 5  ;;  %v5136_v56 = vrot.slane %v6187_v21, 5 }
 0x12a   : > { %v2787_v11 = vrot.slane %v2786_v34, 4  ;;  %v5139_v6 = vrot.slane %v6188_v38, 5  ;;  %v6226_v35 = vcombine.low %v5130_v17, %v5133_v60  ;;  %v2813_v45 = vshll.u32 %v5873_v27, 16  ;;  %v6195_v17 = vld [vmem:[%s7093_s22 + $0xcc] sm:$0xe] }
 0x12b   : > { %v5143_v46 = vrot.slane %v6190_v22, 5  ;;  %v2800_v53 = vor.u32 %v2799_v48, %v2796_v15  ;;  %v5137_v57 = vsel %vm7215_vm7, %v6210_v54, %v5136_v56  ;;  %v5138_v8 = vrot.slane %v5136_v56, 4 }
 0x12c   : > { %6562 = vmatmul.mubr.msk.bf16.gmra.mrb[20].mxu1 %vm322_vm1, %v8243_v51  ;;  %v6211_v20 = vrot.slane %v6189_v52, 9  ;;  %v5888_v2 = vcombine.low %v2758_v9, %v2768_v18  ;;  %v2782_v19 = vsel %vm7140_vm4, %v2777_v26, %v2781_v14  ;;  %v2810_v4 = vor.u32 %v2809_v32, %v2805_v23 }
 0x12d   : > { %6565 = vmatprep.mubr.msk.bf16.mxu1 %vm322_vm1, %v5887_v58  ;;  %v5145_v28 = vrot.slane %v5143_v46, 4  ;;  %v2792_v51 = vsel %vm7140_vm4, %v2787_v11, %v2791_v7  ;;  %v5140_v1 = vsel %vm7215_vm7, %v5138_v8, %v5139_v6  ;;  %v5146_v41 = vrot.slane %v6191_v55, 5 }
 0x12e   : > { %v6212_v5 = vrot.slane %v6192_v36, 9  ;;  %v2815_v58 = vrot.slane %v2813_v45, 5  ;;  %v6227_v10 = vcombine.low %v5137_v57, %v5140_v1  ;;  %v5150_v25 = vrot.slane %v6193_v42, 5 }
 0x12f   : > { %v5153_v39 = vrot.slane %v6194_v12, 5  ;;  %v2801_v47 = vrot.slane %v2800_v53, 4  ;;  %v5144_v13 = vsel %vm7215_vm7, %v6211_v20, %v5143_v46  ;;  %v5147_v44 = vsel %vm7215_vm7, %v5145_v28, %v5146_v41 }
 0x130   : > { %6698 = vmatmul.mubr.msk.bf16.gmra.mrb[20].mxu0 %vm322_vm1, %v6226_v35  ;;  %v5157_v29 = vrot.slane %v6196_v49, 5  ;;  %v5889_v24 = vcombine.low %v2782_v19, %v2792_v51  ;;  %v2811_v30 = vrot.slane %v2810_v4, 4  ;;  %v5151_v62 = vsel %vm7215_vm7, %v6212_v5, %v5150_v25 }
 0x131   : > { %6701 = vmatprep.mubr.msk.bf16.mxu0 %vm322_vm1, %v6227_v10  ;;  %v5152_v63 = vrot.slane %v5150_v25, 4  ;;  %v6228_v14 = vcombine.low %v5144_v13, %v5147_v44  ;;  %v6213_v31 = vrot.slane %v6195_v17, 9  ;;  %v5160_v16 = vrot.slane %v6197_v50, 5 }
 0x132   : > { %v5159_v40 = vrot.slane %v5157_v29, 4  ;;  %v2806_v33 = vsel %vm7140_vm4, %v2801_v47, %v2805_v23  ;;  %v2816_v9 = vsel %vm7140_vm4, %v2811_v30, %v2815_v58 }
 0x133   : > { %v5154_v3 = vsel %vm7215_vm7, %v5152_v63, %v5153_v39  ;;  %v5890_v18 = vcombine.low %v2806_v33, %v2816_v9  ;;  %v5158_v61 = vsel %vm7215_vm7, %v6213_v31, %v5157_v29 }
 0x134   : > { %6566 = vmatmul.mubr.msk.bf16.gmra.mrb[24].mxu1 %vm322_vm1, %v5888_v2  ;;  %v6229_v59 = vcombine.low %v5151_v62, %v5154_v3  ;;  %v5161_v37 = vsel %vm7215_vm7, %v5159_v40, %v5160_v16 }
 0x135   : > { %6569 = vmatprep.mubr.msk.bf16.mxu1 %vm322_vm1, %v5889_v24  ;;  %v6230_v21 = vcombine.low %v5158_v61, %v5161_v37 }
 0x138   : > { %6702 = vmatmul.mubr.msk.bf16.gmra.mrb[24].mxu0 %vm322_vm1, %v6228_v14 }
 0x139   : > { %6705 = vmatprep.mubr.msk.bf16.mxu0 %vm322_vm1, %v6229_v59 }
 0x13c   : > { %6570 = vmatmul.mubr.msk.bf16.gmra.mrb[28].mxu1 %vm322_vm1, %v5890_v18 }
 0x140   : > { %6706 = vmatmul.mubr.msk.bf16.gmra.mrb[28].mxu0 %vm322_vm1, %v6230_v21 }
 0x1b7   : > { %v6509_v38 = vpop.f32.mrb[0].mxu1 }
 0x1b8   : > { %v2194_v43 = vpop.f32.mrb[1].mxu1 }
 0x1b9   : > { %v6510_v60 = vpop.f32.mrb[2].mxu1 }
 0x1ba   : > { %v2197_v34 = vpop.f32.mrb[3].mxu1 }
 0x1bf   : > { %v6513_v27 = vpop.f32.mrb[4].mxu1 }
 0x1c0   : > { %v2210_v15 = vpop.f32.mrb[5].mxu1 }
 0x1c1   : > { %v6514_v48 = vpop.f32.mrb[6].mxu1 }
 0x1c2   : > { %v2213_v22 = vpop.f32.mrb[7].mxu1 }
 0x1c7   : > { %v6517_v26 = vpop.f32.mrb[8].mxu1 }
 0x1c8   : > { %v2226_v23 = vpop.f32.mrb[9].mxu1 }
 0x1c9   : > { %v6518_v32 = vpop.f32.mrb[10].mxu1 }
 0x1ca   : > { %v2229_v54 = vpop.f32.mrb[11].mxu1 }
 0x1cf   : > { %v6521_v0 = vpop.f32.mrb[12].mxu1 }
 0x1d0   : > { %v2242_v52 = vpop.f32.mrb[13].mxu1 }
 0x1d1   : > { %v6522_v11 = vpop.f32.mrb[14].mxu1 }
 0x1d2   : > { %v2245_v7 = vpop.f32.mrb[15].mxu1 }
 0x1db   : > { %v6679_v56 = vpop.f32.mrb[0].mxu0 }
 0x1dc   : > { %v6711_v6 = vadd.f32 %v6679_v56, %v6509_v38  ;;  %v5329_v35 = vpop.f32.mrb[1].mxu0 }
 0x1dd   : > { %v6712_v45 = vadd.f32 %v5329_v35, %v2194_v43  ;;  %v6680_v55 = vpop.f32.mrb[2].mxu0 }
 0x1de   : > { %5554 = vst [vmem:[%s8327_s12 + $0x10] sm:$0xff] %v6711_v6  ;;  %v6713_v46 = vadd.f32 %v6680_v55, %v6510_v60  ;;  %v5332_v36 = vpop.f32.mrb[3].mxu0 }
 0x1df   : > { %5552 = vst [vmem:[%s8327_s12] sm:$0xff] %v6712_v45  ;;  %v6714_v53 = vadd.f32 %v5332_v36, %v2197_v34 }
 0x1e0   : > { %5555 = vst [vmem:[%s8327_s12 + $0x18] sm:$0xff] %v6713_v46 }
 0x1e1   : > { %5553 = vst [vmem:[%s8327_s12 + $0x8] sm:$0xff] %v6714_v53 }
 0x1e3   : > { %v6683_v57 = vpop.f32.mrb[4].mxu0 }
 0x1e4   : > { %v6715_v8 = vadd.f32 %v6683_v57, %v6513_v27  ;;  %v5345_v20 = vpop.f32.mrb[5].mxu0 }
 0x1e5   : > { %v6716_v42 = vadd.f32 %v5345_v20, %v2210_v15  ;;  %v6684_v12 = vpop.f32.mrb[6].mxu0 }
 0x1e6   : > { %5558 = vst [vmem:[%s8327_s12 + $0x30] sm:$0xff] %v6715_v8  ;;  %v6717_v2 = vadd.f32 %v6684_v12, %v6514_v48  ;;  %v5348_v19 = vpop.f32.mrb[7].mxu0 }
 0x1e7   : > { %5556 = vst [vmem:[%s8327_s12 + $0x20] sm:$0xff] %v6716_v42  ;;  %v6718_v4 = vadd.f32 %v5348_v19, %v2213_v22 }
 0x1e8   : > { %5559 = vst [vmem:[%s8327_s12 + $0x38] sm:$0xff] %v6717_v2 }
 0x1e9   : > { %5557 = vst [vmem:[%s8327_s12 + $0x28] sm:$0xff] %v6718_v4 }
 0x1eb   : > { %v6687_v28 = vpop.f32.mrb[8].mxu0 }
 0x1ec   : > { %v6719_v49 = vadd.f32 %v6687_v28, %v6517_v26  ;;  %v5361_v51 = vpop.f32.mrb[9].mxu0 }
 0x1ed   : > { %v6720_v1 = vadd.f32 %v5361_v51, %v2226_v23  ;;  %v6688_v41 = vpop.f32.mrb[10].mxu0 }
 0x1ee   : > { %5562 = vst [vmem:[%s8327_s12 + $0x50] sm:$0xff] %v6719_v49  ;;  %v6721_v5 = vadd.f32 %v6688_v41, %v6518_v32  ;;  %v5364_v58 = vpop.f32.mrb[11].mxu0 }
 0x1ef   : > { %5560 = vst [vmem:[%s8327_s12 + $0x40] sm:$0xff] %v6720_v1  ;;  %v6722_v10 = vadd.f32 %v5364_v58, %v2229_v54 }
 0x1f0   : > { %5563 = vst [vmem:[%s8327_s12 + $0x58] sm:$0xff] %v6721_v5 }
 0x1f1   : > { %5561 = vst [vmem:[%s8327_s12 + $0x48] sm:$0xff] %v6722_v10 }
 0x1f3   : > { %v6691_v25 = vpop.f32.mrb[12].mxu0 }
 0x1f4   : > { %v6723_v39 = vadd.f32 %v6691_v25, %v6521_v0  ;;  %v5377_v47 = vpop.f32.mrb[13].mxu0 }
 0x1f5   : > { %v6724_v13 = vadd.f32 %v5377_v47, %v2242_v52  ;;  %v6692_v44 = vpop.f32.mrb[14].mxu0 }
 0x1f6   : > { %5566 = vst [vmem:[%s8327_s12 + $0x70] sm:$0xff] %v6723_v39  ;;  %v6725_v29 = vadd.f32 %v6692_v44, %v6522_v11  ;;  %v5380_v24 = vpop.f32.mrb[15].mxu0 }
 0x1f7   : > { %5564 = vst [vmem:[%s8327_s12 + $0x60] sm:$0xff] %v6724_v13  ;;  %v6726_v30 = vadd.f32 %v5380_v24, %v2245_v7  ;;  %v6559_v62 = vpop.f32.mrb[16].mxu1 }
 0x1f8   : > { %5567 = vst [vmem:[%s8327_s12 + $0x78] sm:$0xff] %v6725_v29  ;;  %v3048_v63 = vpop.f32.mrb[17].mxu1 }
 0x1f9   : > { %5565 = vst [vmem:[%s8327_s12 + $0x68] sm:$0xff] %v6726_v30  ;;  %v6560_v17 = vpop.f32.mrb[18].mxu1 }
 0x1fa   : > { %v3051_v50 = vpop.f32.mrb[19].mxu1 }
 0x1fb   : > { %v6695_v14 = vpop.f32.mrb[16].mxu0 }
 0x1fc   : > { %v6727_v3 = vadd.f32 %v6695_v14, %v6559_v62  ;;  %v5393_v59 = vpop.f32.mrb[17].mxu0 }
 0x1fd   : > { %v6728_v31 = vadd.f32 %v5393_v59, %v3048_v63  ;;  %v6696_v40 = vpop.f32.mrb[18].mxu0 }
 0x1fe   : > { %5570 = vst [vmem:[%s8327_s12 + $0x90] sm:$0xff] %v6727_v3  ;;  %v6729_v16 = vadd.f32 %v6696_v40, %v6560_v17  ;;  %v5396_v33 = vpop.f32.mrb[19].mxu0 }
 0x1ff   : > { %5568 = vst [vmem:[%s8327_s12 + $0x80] sm:$0xff] %v6728_v31  ;;  %v6730_v9 = vadd.f32 %v5396_v33, %v3051_v50  ;;  %v6563_v18 = vpop.f32.mrb[20].mxu1 }
 0x200   : > { %5571 = vst [vmem:[%s8327_s12 + $0x98] sm:$0xff] %v6729_v16  ;;  %v3064_v61 = vpop.f32.mrb[21].mxu1 }
 0x201   : > { %5569 = vst [vmem:[%s8327_s12 + $0x88] sm:$0xff] %v6730_v9  ;;  %v6564_v37 = vpop.f32.mrb[22].mxu1 }
 0x202   : > { %v3067_v21 = vpop.f32.mrb[23].mxu1 }
 0x203   : > { %v6699_v38 = vpop.f32.mrb[20].mxu0 }
 0x204   : > { %v6731_v43 = vadd.f32 %v6699_v38, %v6563_v18  ;;  %v5409_v60 = vpop.f32.mrb[21].mxu0 }
 0x205   : > { %v6732_v34 = vadd.f32 %v5409_v60, %v3064_v61  ;;  %v6700_v27 = vpop.f32.mrb[22].mxu0 }
 0x206   : > { %5574 = vst [vmem:[%s8327_s12 + $0xb0] sm:$0xff] %v6731_v43  ;;  %v6733_v15 = vadd.f32 %v6700_v27, %v6564_v37  ;;  %v5412_v48 = vpop.f32.mrb[23].mxu0 }
 0x207   : > { %5572 = vst [vmem:[%s8327_s12 + $0xa0] sm:$0xff] %v6732_v34  ;;  %v6734_v22 = vadd.f32 %v5412_v48, %v3067_v21  ;;  %v6567_v26 = vpop.f32.mrb[24].mxu1 }
 0x208   : > { %5575 = vst [vmem:[%s8327_s12 + $0xb8] sm:$0xff] %v6733_v15  ;;  %v3080_v23 = vpop.f32.mrb[25].mxu1 }
 0x209   : > { %5573 = vst [vmem:[%s8327_s12 + $0xa8] sm:$0xff] %v6734_v22  ;;  %v6568_v32 = vpop.f32.mrb[26].mxu1 }
 0x20a   : > { %v3083_v54 = vpop.f32.mrb[27].mxu1 }
 0x20b   : > { %v6703_v0 = vpop.f32.mrb[24].mxu0 }
 0x20c   : > { %v6735_v52 = vadd.f32 %v6703_v0, %v6567_v26  ;;  %v5425_v11 = vpop.f32.mrb[25].mxu0 }
 0x20d   : > { %v6736_v7 = vadd.f32 %v5425_v11, %v3080_v23  ;;  %v6704_v56 = vpop.f32.mrb[26].mxu0 }
 0x20e   : > { %5578 = vst [vmem:[%s8327_s12 + $0xd0] sm:$0xff] %v6735_v52  ;;  %v6737_v6 = vadd.f32 %v6704_v56, %v6568_v32  ;;  %v5428_v35 = vpop.f32.mrb[27].mxu0 }
 0x20f   : > { %5576 = vst [vmem:[%s8327_s12 + $0xc0] sm:$0xff] %v6736_v7  ;;  %v6738_v45 = vadd.f32 %v5428_v35, %v3083_v54  ;;  %v6571_v55 = vpop.f32.mrb[28].mxu1 }
 0x210   : > { %5579 = vst [vmem:[%s8327_s12 + $0xd8] sm:$0xff] %v6737_v6  ;;  %v3096_v46 = vpop.f32.mrb[29].mxu1 }
 0x211   : > { %5577 = vst [vmem:[%s8327_s12 + $0xc8] sm:$0xff] %v6738_v45  ;;  %v6572_v36 = vpop.f32.mrb[30].mxu1 }
 0x212   : > { %v3099_v53 = vpop.f32.mrb[31].mxu1 }
 0x213   : > { %v6707_v57 = vpop.f32.mrb[28].mxu0 }
 0x214   : > { %v6739_v8 = vadd.f32 %v6707_v57, %v6571_v55  ;;  %v5441_v20 = vpop.f32.mrb[29].mxu0 }
 0x215   : > { %v6740_v42 = vadd.f32 %v5441_v20, %v3096_v46  ;;  %v6708_v12 = vpop.f32.mrb[30].mxu0 }
 0x216   : > { %5582 = vst [vmem:[%s8327_s12 + $0xf0] sm:$0xff] %v6739_v8  ;;  %v6741_v2 = vadd.f32 %v6708_v12, %v6572_v36  ;;  %v5444_v19 = vpop.f32.mrb[31].mxu0 }
 0x217   : > { %5580 = vst [vmem:[%s8327_s12 + $0xe0] sm:$0xff] %v6740_v42  ;;  %v6742_v4 = vadd.f32 %v5444_v19, %v3099_v53 }
 0x218   : > { %5583 = vst [vmem:[%s8327_s12 + $0xf8] sm:$0xff] %v6741_v2 }
 0x219   : > { %5581 = vst [vmem:[%s8327_s12 + $0xe8] sm:$0xff] %v6742_v4 }
 0x21a PF: > { %s12_s9 = sadd.s32 1, %s7041_s9  }
 0x21b   : > { %p9_p4 = scmp.ge.s32.totalorder %s12_s9, 4  }
 0x21d   :  { %11 = sbr.rel (!%p9_p4) target bundleno = 1 (0x1), region = 68 }

</bundles_post_ra>
